<compile_context>
chip_gen: v6e
topology: v6e:2x2x1
jax: 0.10.0
libtpu: 0.0.40
codegen_flags: <defaults>
</compile_context>

<pallas_src>
import functools

import jax
import jax.numpy as jnp
from jax import lax
from jax.experimental import pallas as pl
from jax.experimental.pallas import tpu as pltpu

LAYERS = 10          # matches `layers = 10` in the reference script
LANE = 128           # TPU lane width
SUBLANE = 8


def _round_up(x, m):
    return (x + m - 1) // m * m


def _cdiv(a, b):
    return -(-a // b)


def _default_num_chains():
    """4 independent batch sub-chains on v5e (four 128x128 MXUs), else 2."""
    try:
        kind = jax.devices()[0].device_kind.lower()
        if ("v5e" in kind) or ("v5 lite" in kind) or ("v5lite" in kind):
            return 4
    except Exception:
        pass
    return 2


# ---------------------------------------------------------------------------
# Kernel
# ---------------------------------------------------------------------------
def _mlp_kernel(x_ref, w_in_ref, b_in_ref, w_hid_ref, b_hid_ref,
                w_out_ref, b_out_ref, o_ref, *, num_chains, n_hidden):
    tm = x_ref.shape[0]
    sub = tm // num_chains

    # Resident weights (constant index_map -> stay in VMEM across grid steps).
    w_in = w_in_ref[...]
    w_hid = w_hid_ref[...]
    w_out = w_out_ref[...]
    wdt = w_hid.dtype                      # compute dtype (f32 or bf16)

    # Biases kept as (1, hp) rows; added with implicit broadcast (saves vregs,
    # the per-layer VPU broadcast is free filler on an MXU-bound chain).
    b_in = b_in_ref[...]
    b_hid = b_hid_ref[...]
    b_out = b_out_ref[...]

    # Input layer: num_chains independent batch sub-tiles.
    hs = tuple(
        jnp.dot(x_ref[c * sub:(c + 1) * sub, :].astype(wdt), w_in,
                preferred_element_type=jnp.float32) + b_in
        for c in range(num_chains))

    # (layers - 1) applications of the SAME hidden layer, chains interleaved.
    # fori_loop(unroll=True): full unroll for the LLO scheduler, bounded live
    # ranges so larger tm does not spill the 64-entry vreg file.
    def body(_, carry):
        return tuple(
            jnp.dot(h.astype(wdt), w_hid,
                    preferred_element_type=jnp.float32) + b_hid
            for h in carry)

    hs = lax.fori_loop(0, n_hidden, body, hs, unroll=True)

    # Output layer — lane-dense (padded to 128) unmasked stores.
    for c in range(num_chains):
        o_ref[c * sub:(c + 1) * sub, :] = (
            jnp.dot(hs[c].astype(wdt), w_out,
                    preferred_element_type=jnp.float32) + b_out
        ).astype(o_ref.dtype)


# ---------------------------------------------------------------------------
# Parameter prep (one-time): transpose PyTorch (out,in) -> (in,out), pad.
# ---------------------------------------------------------------------------
def prepare_params(params, compute_dtype=jnp.float32):
    """Transpose weights to (in,out) and pad:
       * input feature dim  -> multiple of 8 (sublane only; avoids 32x HBM
         read inflation of x when d_inp << 128)
       * hidden/output dims -> multiple of 128 (lane-dense MXU tiles / vst)
       compute_dtype=jnp.bfloat16 is the recommended setting on v5e/v6e/v7x
       (3x+ fewer MXU passes per layer; accumulation stays f32)."""
    w_in, b_in = params["w_in"], params["b_in"]
    w_hid, b_hid = params["w_hid"], params["b_hid"]
    w_out, b_out = params["w_out"], params["b_out"]
    d_inp = w_in.shape[1]
    d_hid = w_in.shape[0]
    d_out = w_out.shape[0]
    kp = _round_up(d_inp, SUBLANE)
    hp = _round_up(d_hid, LANE)
    op = _round_up(d_out, LANE)

    def pad_t(w, rows, cols):
        wt = w.T
        return jnp.pad(wt, ((0, rows - wt.shape[0]),
                            (0, cols - wt.shape[1]))).astype(compute_dtype)

    return dict(
        w_in=pad_t(w_in, kp, hp),
        w_hid=pad_t(w_hid, hp, hp),
        w_out=pad_t(w_out, hp, op),
        # biases stay f32 (added to the f32 MXU accumulator)
        b_in=jnp.pad(b_in, (0, hp - d_hid))[None, :].astype(jnp.float32),
        b_hid=jnp.pad(b_hid, (0, hp - d_hid))[None, :].astype(jnp.float32),
        b_out=jnp.pad(b_out, (0, op - d_out))[None, :].astype(jnp.float32),
        d_inp=d_inp, d_out=d_out,
    )


# ---------------------------------------------------------------------------
# pallas_call wrapper
# ---------------------------------------------------------------------------
@functools.partial(jax.jit, static_argnames=("tm", "num_chains"))
def _mlp_forward_padded(x_p, w_in, b_in, w_hid, b_hid, w_out, b_out,
                        *, tm, num_chains):
    bp, kp = x_p.shape
    hp = w_hid.shape[1]
    op = w_out.shape[1]
    grid = (bp // tm,)

    weight_bytes = sum(int(w.size) * w.dtype.itemsize
                       for w in (w_in, w_hid, w_out))
    bias_bytes = 4 * (b_in.size + b_hid.size + b_out.size)
    # weights + double-buffered in/out activation tiles + live intermediates
    needed = (weight_bytes + int(bias_bytes)
              + 4 * (2 * tm * kp + 2 * tm * op) + 4 * 2 * tm * hp)
    vmem_limit = int(min(64 << 20, max(32 << 20, 2 * needed)))

    flops = 2 * bp * (kp * hp + (LAYERS - 1) * hp * hp + hp * op)
    bytes_accessed = int(4 * (x_p.size + bp * op) + weight_bytes + bias_bytes)

    kernel = functools.partial(_mlp_kernel, num_chains=num_chains,
                               n_hidden=LAYERS - 1)
    const = lambda i: (0, 0)        # weights/biases: VMEM-resident across grid
    return pl.pallas_call(
        kernel,
        out_shape=jax.ShapeDtypeStruct((bp, op), jnp.float32),
        grid=grid,
        in_specs=[
            pl.BlockSpec((tm, kp), lambda i: (i, 0)),   # activations: pipelined
            pl.BlockSpec((kp, hp), const),
            pl.BlockSpec((1, hp), const),
            pl.BlockSpec((hp, hp), const),
            pl.BlockSpec((1, hp), const),
            pl.BlockSpec((hp, op), const),
            pl.BlockSpec((1, op), const),
        ],
        out_specs=pl.BlockSpec((tm, op), lambda i: (i, 0)),
        compiler_params=pltpu.CompilerParams(
            dimension_semantics=("parallel",),
            vmem_limit_bytes=vmem_limit),
        cost_estimate=pl.CostEstimate(flops=int(flops), transcendentals=0,
                                      bytes_accessed=bytes_accessed),
    )(x_p, w_in, b_in, w_hid, b_hid, w_out, b_out)


def _choose_tm(b, kp, hp, op, weight_bytes, num_chains, tm_req):
    """Largest sublane/chain-aligned tile <= tm_req that fits the VMEM budget;
    capped so the grid has >= 2 steps when the batch is large enough (v7x)."""
    align = SUBLANE * num_chains
    bp0 = _round_up(b, align)
    tm = min(_round_up(tm_req, align), bp0)
    if bp0 >= 2 * align:                       # allow 2-TC sharding on v7x
        tm = min(tm, _round_up(_cdiv(bp0, 2), align))
    budget = (48 << 20) - weight_bytes         # v7x-safe activation budget

    def act_bytes(t):
        return 4 * (2 * t * kp + 2 * t * op + 2 * t * hp)

    while tm > align and act_bytes(tm) > budget:
        tm = max(align, _round_up(tm // 2, align))
    return max(tm, align)


def mlp_forward(x, prep, *, tm=1024, num_chains=None):
    """x: (B, D_inp) f32. prep: output of prepare_params. Returns (B, D_out)."""
    if num_chains is None:
        num_chains = _default_num_chains()
    b, d_inp = x.shape
    kp = prep["w_in"].shape[0]
    hp = prep["w_hid"].shape[1]
    op = prep["w_out"].shape[1]
    weight_bytes = sum(int(prep[k].size) * prep[k].dtype.itemsize
                       for k in ("w_in", "w_hid", "w_out"))
    tm = _choose_tm(b, kp, hp, op, weight_bytes, num_chains, tm)
    bp = _round_up(_round_up(b, SUBLANE * num_chains), tm)
    # Only sublane-pad the feature dim (kp), full 128-lane pad of x removed.
    x_p = jnp.pad(x, ((0, bp - b), (0, kp - d_inp)))
    out_p = _mlp_forward_padded(x_p, prep["w_in"], prep["b_in"],
                                prep["w_hid"], prep["b_hid"],
                                prep["w_out"], prep["b_out"],
                                tm=tm, num_chains=num_chains)
    return out_p[:b, :prep["d_out"]]


# ---------------------------------------------------------------------------
# Reference + demo
# ---------------------------------------------------------------------------
def init_params(key, d_inp, d_hid, d_out):
    """Deterministic init mimicking torch.nn.Linear's U(-1/sqrt(fan_in), ...)."""
    ks = jax.random.split(key, 6)

    def lin(kw, kb, fan_in, fan_out):
        bound = 1.0 / jnp.sqrt(fan_in)
        w = jax.random.uniform(kw, (fan_out, fan_in), jnp.float32, -bound, bound)
        b = jax.random.uniform(kb, (fan_out,), jnp.float32, -bound, bound)
        return w, b

    w_in, b_in = lin(ks[0], ks[1], d_inp, d_hid)
    w_hid, b_hid = lin(ks[2], ks[3], d_hid, d_hid)
    w_out, b_out = lin(ks[4], ks[5], d_hid, d_out)
    return dict(w_in=w_in, b_in=b_in, w_hid=w_hid, b_hid=b_hid,
                w_out=w_out, b_out=b_out)


def mlp_reference(x, p):
    h = x @ p["w_in"].T + p["b_in"]
    for _ in range(LAYERS - 1):
        h = h @ p["w_hid"].T + p["b_hid"]
    return h @ p["w_out"].T + p["b_out"]


if __name__ == "__main__":
    key = jax.random.PRNGKey(0)
    k_x, k_p = jax.random.split(key)

    B, D_inp, D_hid, D_out = 8, 4, 32, 3
    x = jax.random.normal(k_x, (B, D_inp), jnp.float32)
    params = init_params(k_p, D_inp, D_hid, D_out)
    y_ref = mlp_reference(x, params)

    # f32 path: bit-tight correctness check against the reference chain.
    prep_f32 = prepare_params(params, compute_dtype=jnp.float32)
    y = mlp_forward(x, prep_f32)
    jax.block_until_ready(y)
    assert y.shape == (B, D_out)
    assert jnp.allclose(y, y_ref, atol=1e-4, rtol=1e-4), \
        float(jnp.max(jnp.abs(y - y_ref)))

    # bf16 weights (recommended on v5e/v6e/v7x for MXU throughput): exercise
    # the path; 10 chained bf16 matmuls compound rounding, so only sanity-check.
    prep_bf16 = prepare_params(params, compute_dtype=jnp.bfloat16)
    y_bf16 = mlp_forward(x, prep_bf16)
    jax.block_until_ready(y_bf16)
    assert y_bf16.shape == (B, D_out)
    assert bool(jnp.all(jnp.isfinite(y_bf16)))

    print("KERNEL_OK")
</pallas_src>

<mosaic_0001>
module attributes {stable_mosaic.version = 11 : i64} {
  func.func @_mlp_kernel(%arg0: i32, %arg1: memref<16x8xf32, #tpu.memory_space<vmem>>, %arg2: memref<8x128xf32, #tpu.memory_space<vmem>>, %arg3: memref<1x128xf32, #tpu.memory_space<vmem>>, %arg4: memref<128x128xf32, #tpu.memory_space<vmem>>, %arg5: memref<1x128xf32, #tpu.memory_space<vmem>>, %arg6: memref<128x128xf32, #tpu.memory_space<vmem>>, %arg7: memref<1x128xf32, #tpu.memory_space<vmem>>, %arg8: memref<16x128xf32, #tpu.memory_space<vmem>>) attributes {dimension_semantics = [#tpu.dimension_semantics<parallel>], iteration_bounds = array<i64: 1>, scalar_prefetch = 0 : i64, scratch_operands = 0 : i64, tpu.core_type = #tpu.core_type<tc>, window_params = [{transform_indices = @transform_0, window_bounds = array<i64: 16, 8>}, {pipeline_mode = #tpu.pipeline_mode<synchronous>, transform_indices = @transform_1, window_bounds = array<i64: 8, 128>}, {pipeline_mode = #tpu.pipeline_mode<synchronous>, transform_indices = @transform_2, window_bounds = array<i64: 1, 128>}, {pipeline_mode = #tpu.pipeline_mode<synchronous>, transform_indices = @transform_3, window_bounds = array<i64: 128, 128>}, {pipeline_mode = #tpu.pipeline_mode<synchronous>, transform_indices = @transform_4, window_bounds = array<i64: 1, 128>}, {pipeline_mode = #tpu.pipeline_mode<synchronous>, transform_indices = @transform_5, window_bounds = array<i64: 128, 128>}, {pipeline_mode = #tpu.pipeline_mode<synchronous>, transform_indices = @transform_6, window_bounds = array<i64: 1, 128>}, {transform_indices = @transform_7, window_bounds = array<i64: 16, 128>}]} {
    %c0 = arith.constant 0 : index
    %c0_0 = arith.constant 0 : index
    %0 = vector.load %arg2[%c0, %c0_0] : memref<8x128xf32, #tpu.memory_space<vmem>>, vector<8x128xf32>
    %c0_1 = arith.constant 0 : index
    %c0_2 = arith.constant 0 : index
    %1 = vector.load %arg4[%c0_1, %c0_2] : memref<128x128xf32, #tpu.memory_space<vmem>>, vector<128x128xf32>
    %c0_3 = arith.constant 0 : index
    %c0_4 = arith.constant 0 : index
    %2 = vector.load %arg6[%c0_3, %c0_4] : memref<128x128xf32, #tpu.memory_space<vmem>>, vector<128x128xf32>
    %c0_5 = arith.constant 0 : index
    %c0_6 = arith.constant 0 : index
    %3 = vector.load %arg3[%c0_5, %c0_6] : memref<1x128xf32, #tpu.memory_space<vmem>>, vector<1x128xf32>
    %c0_7 = arith.constant 0 : index
    %c0_8 = arith.constant 0 : index
    %4 = vector.load %arg5[%c0_7, %c0_8] : memref<1x128xf32, #tpu.memory_space<vmem>>, vector<1x128xf32>
    %c0_9 = arith.constant 0 : index
    %c0_10 = arith.constant 0 : index
    %5 = vector.load %arg7[%c0_9, %c0_10] : memref<1x128xf32, #tpu.memory_space<vmem>>, vector<1x128xf32>
    %c0_11 = arith.constant 0 : index
    %c0_12 = arith.constant 0 : index
    %6 = vector.load %arg1[%c0_11, %c0_12] : memref<16x8xf32, #tpu.memory_space<vmem>>, vector<8x8xf32>
    %cst = arith.constant dense<0.000000e+00> : vector<8x128xf32>
    %7 = tpu.matmul %6, %0, %cst {dimension_numbers = #tpu.dot_dimension_numbers<[1], [0], [0], [1], [0, 0, 1, 1], [], []>} : vector<8x8xf32>, vector<8x128xf32>, vector<8x128xf32> -> vector<8x128xf32>
    %8 = vector.broadcast %3 : vector<1x128xf32> to vector<8x128xf32>
    %9 = arith.addf %7, %8 : vector<8x128xf32>
    %c8 = arith.constant 8 : index
    %c0_13 = arith.constant 0 : index
    %10 = vector.load %arg1[%c8, %c0_13] : memref<16x8xf32, #tpu.memory_space<vmem>>, vector<8x8xf32>
    %cst_14 = arith.constant dense<0.000000e+00> : vector<8x128xf32>
    %11 = tpu.matmul %10, %0, %cst_14 {dimension_numbers = #tpu.dot_dimension_numbers<[1], [0], [0], [1], [0, 0, 1, 1], [], []>} : vector<8x8xf32>, vector<8x128xf32>, vector<8x128xf32> -> vector<8x128xf32>
    %12 = vector.broadcast %3 : vector<1x128xf32> to vector<8x128xf32>
    %13 = arith.addf %11, %12 : vector<8x128xf32>
    %c0_i32 = arith.constant 0 : i32
    %cst_15 = arith.constant dense<0.000000e+00> : vector<8x128xf32>
    %14 = tpu.matmul %9, %1, %cst_15 {dimension_numbers = #tpu.dot_dimension_numbers<[1], [0], [0], [1], [0, 0, 1, 1], [], []>} : vector<8x128xf32>, vector<128x128xf32>, vector<8x128xf32> -> vector<8x128xf32>
    %15 = vector.broadcast %4 : vector<1x128xf32> to vector<8x128xf32>
    %16 = arith.addf %14, %15 : vector<8x128xf32>
    %cst_16 = arith.constant dense<0.000000e+00> : vector<8x128xf32>
    %17 = tpu.matmul %13, %1, %cst_16 {dimension_numbers = #tpu.dot_dimension_numbers<[1], [0], [0], [1], [0, 0, 1, 1], [], []>} : vector<8x128xf32>, vector<128x128xf32>, vector<8x128xf32> -> vector<8x128xf32>
    %18 = vector.broadcast %4 : vector<1x128xf32> to vector<8x128xf32>
    %19 = arith.addf %17, %18 : vector<8x128xf32>
    %c1_i32 = arith.constant 1 : i32
    %cst_17 = arith.constant dense<0.000000e+00> : vector<8x128xf32>
    %20 = tpu.matmul %16, %1, %cst_17 {dimension_numbers = #tpu.dot_dimension_numbers<[1], [0], [0], [1], [0, 0, 1, 1], [], []>} : vector<8x128xf32>, vector<128x128xf32>, vector<8x128xf32> -> vector<8x128xf32>
    %21 = vector.broadcast %4 : vector<1x128xf32> to vector<8x128xf32>
    %22 = arith.addf %20, %21 : vector<8x128xf32>
    %cst_18 = arith.constant dense<0.000000e+00> : vector<8x128xf32>
    %23 = tpu.matmul %19, %1, %cst_18 {dimension_numbers = #tpu.dot_dimension_numbers<[1], [0], [0], [1], [0, 0, 1, 1], [], []>} : vector<8x128xf32>, vector<128x128xf32>, vector<8x128xf32> -> vector<8x128xf32>
    %24 = vector.broadcast %4 : vector<1x128xf32> to vector<8x128xf32>
    %25 = arith.addf %23, %24 : vector<8x128xf32>
    %c2_i32 = arith.constant 2 : i32
    %cst_19 = arith.constant dense<0.000000e+00> : vector<8x128xf32>
    %26 = tpu.matmul %22, %1, %cst_19 {dimension_numbers = #tpu.dot_dimension_numbers<[1], [0], [0], [1], [0, 0, 1, 1], [], []>} : vector<8x128xf32>, vector<128x128xf32>, vector<8x128xf32> -> vector<8x128xf32>
    %27 = vector.broadcast %4 : vector<1x128xf32> to vector<8x128xf32>
    %28 = arith.addf %26, %27 : vector<8x128xf32>
    %cst_20 = arith.constant dense<0.000000e+00> : vector<8x128xf32>
    %29 = tpu.matmul %25, %1, %cst_20 {dimension_numbers = #tpu.dot_dimension_numbers<[1], [0], [0], [1], [0, 0, 1, 1], [], []>} : vector<8x128xf32>, vector<128x128xf32>, vector<8x128xf32> -> vector<8x128xf32>
    %30 = vector.broadcast %4 : vector<1x128xf32> to vector<8x128xf32>
    %31 = arith.addf %29, %30 : vector<8x128xf32>
    %c3_i32 = arith.constant 3 : i32
    %cst_21 = arith.constant dense<0.000000e+00> : vector<8x128xf32>
    %32 = tpu.matmul %28, %1, %cst_21 {dimension_numbers = #tpu.dot_dimension_numbers<[1], [0], [0], [1], [0, 0, 1, 1], [], []>} : vector<8x128xf32>, vector<128x128xf32>, vector<8x128xf32> -> vector<8x128xf32>
    %33 = vector.broadcast %4 : vector<1x128xf32> to vector<8x128xf32>
    %34 = arith.addf %32, %33 : vector<8x128xf32>
    %cst_22 = arith.constant dense<0.000000e+00> : vector<8x128xf32>
    %35 = tpu.matmul %31, %1, %cst_22 {dimension_numbers = #tpu.dot_dimension_numbers<[1], [0], [0], [1], [0, 0, 1, 1], [], []>} : vector<8x128xf32>, vector<128x128xf32>, vector<8x128xf32> -> vector<8x128xf32>
    %36 = vector.broadcast %4 : vector<1x128xf32> to vector<8x128xf32>
    %37 = arith.addf %35, %36 : vector<8x128xf32>
    %c4_i32 = arith.constant 4 : i32
    %cst_23 = arith.constant dense<0.000000e+00> : vector<8x128xf32>
    %38 = tpu.matmul %34, %1, %cst_23 {dimension_numbers = #tpu.dot_dimension_numbers<[1], [0], [0], [1], [0, 0, 1, 1], [], []>} : vector<8x128xf32>, vector<128x128xf32>, vector<8x128xf32> -> vector<8x128xf32>
    %39 = vector.broadcast %4 : vector<1x128xf32> to vector<8x128xf32>
    %40 = arith.addf %38, %39 : vector<8x128xf32>
    %cst_24 = arith.constant dense<0.000000e+00> : vector<8x128xf32>
    %41 = tpu.matmul %37, %1, %cst_24 {dimension_numbers = #tpu.dot_dimension_numbers<[1], [0], [0], [1], [0, 0, 1, 1], [], []>} : vector<8x128xf32>, vector<128x128xf32>, vector<8x128xf32> -> vector<8x128xf32>
    %42 = vector.broadcast %4 : vector<1x128xf32> to vector<8x128xf32>
    %43 = arith.addf %41, %42 : vector<8x128xf32>
    %c5_i32 = arith.constant 5 : i32
    %cst_25 = arith.constant dense<0.000000e+00> : vector<8x128xf32>
    %44 = tpu.matmul %40, %1, %cst_25 {dimension_numbers = #tpu.dot_dimension_numbers<[1], [0], [0], [1], [0, 0, 1, 1], [], []>} : vector<8x128xf32>, vector<128x128xf32>, vector<8x128xf32> -> vector<8x128xf32>
    %45 = vector.broadcast %4 : vector<1x128xf32> to vector<8x128xf32>
    %46 = arith.addf %44, %45 : vector<8x128xf32>
    %cst_26 = arith.constant dense<0.000000e+00> : vector<8x128xf32>
    %47 = tpu.matmul %43, %1, %cst_26 {dimension_numbers = #tpu.dot_dimension_numbers<[1], [0], [0], [1], [0, 0, 1, 1], [], []>} : vector<8x128xf32>, vector<128x128xf32>, vector<8x128xf32> -> vector<8x128xf32>
    %48 = vector.broadcast %4 : vector<1x128xf32> to vector<8x128xf32>
    %49 = arith.addf %47, %48 : vector<8x128xf32>
    %c6_i32 = arith.constant 6 : i32
    %cst_27 = arith.constant dense<0.000000e+00> : vector<8x128xf32>
    %50 = tpu.matmul %46, %1, %cst_27 {dimension_numbers = #tpu.dot_dimension_numbers<[1], [0], [0], [1], [0, 0, 1, 1], [], []>} : vector<8x128xf32>, vector<128x128xf32>, vector<8x128xf32> -> vector<8x128xf32>
    %51 = vector.broadcast %4 : vector<1x128xf32> to vector<8x128xf32>
    %52 = arith.addf %50, %51 : vector<8x128xf32>
    %cst_28 = arith.constant dense<0.000000e+00> : vector<8x128xf32>
    %53 = tpu.matmul %49, %1, %cst_28 {dimension_numbers = #tpu.dot_dimension_numbers<[1], [0], [0], [1], [0, 0, 1, 1], [], []>} : vector<8x128xf32>, vector<128x128xf32>, vector<8x128xf32> -> vector<8x128xf32>
    %54 = vector.broadcast %4 : vector<1x128xf32> to vector<8x128xf32>
    %55 = arith.addf %53, %54 : vector<8x128xf32>
    %c7_i32 = arith.constant 7 : i32
    %cst_29 = arith.constant dense<0.000000e+00> : vector<8x128xf32>
    %56 = tpu.matmul %52, %1, %cst_29 {dimension_numbers = #tpu.dot_dimension_numbers<[1], [0], [0], [1], [0, 0, 1, 1], [], []>} : vector<8x128xf32>, vector<128x128xf32>, vector<8x128xf32> -> vector<8x128xf32>
    %57 = vector.broadcast %4 : vector<1x128xf32> to vector<8x128xf32>
    %58 = arith.addf %56, %57 : vector<8x128xf32>
    %cst_30 = arith.constant dense<0.000000e+00> : vector<8x128xf32>
    %59 = tpu.matmul %55, %1, %cst_30 {dimension_numbers = #tpu.dot_dimension_numbers<[1], [0], [0], [1], [0, 0, 1, 1], [], []>} : vector<8x128xf32>, vector<128x128xf32>, vector<8x128xf32> -> vector<8x128xf32>
    %60 = vector.broadcast %4 : vector<1x128xf32> to vector<8x128xf32>
    %61 = arith.addf %59, %60 : vector<8x128xf32>
    %c8_i32 = arith.constant 8 : i32
    %cst_31 = arith.constant dense<0.000000e+00> : vector<8x128xf32>
    %62 = tpu.matmul %58, %1, %cst_31 {dimension_numbers = #tpu.dot_dimension_numbers<[1], [0], [0], [1], [0, 0, 1, 1], [], []>} : vector<8x128xf32>, vector<128x128xf32>, vector<8x128xf32> -> vector<8x128xf32>
    %63 = vector.broadcast %4 : vector<1x128xf32> to vector<8x128xf32>
    %64 = arith.addf %62, %63 : vector<8x128xf32>
    %cst_32 = arith.constant dense<0.000000e+00> : vector<8x128xf32>
    %65 = tpu.matmul %61, %1, %cst_32 {dimension_numbers = #tpu.dot_dimension_numbers<[1], [0], [0], [1], [0, 0, 1, 1], [], []>} : vector<8x128xf32>, vector<128x128xf32>, vector<8x128xf32> -> vector<8x128xf32>
    %66 = vector.broadcast %4 : vector<1x128xf32> to vector<8x128xf32>
    %67 = arith.addf %65, %66 : vector<8x128xf32>
    %cst_33 = arith.constant dense<0.000000e+00> : vector<8x128xf32>
    %68 = tpu.matmul %64, %2, %cst_33 {dimension_numbers = #tpu.dot_dimension_numbers<[1], [0], [0], [1], [0, 0, 1, 1], [], []>} : vector<8x128xf32>, vector<128x128xf32>, vector<8x128xf32> -> vector<8x128xf32>
    %69 = vector.broadcast %5 : vector<1x128xf32> to vector<8x128xf32>
    %70 = arith.addf %68, %69 : vector<8x128xf32>
    %c0_34 = arith.constant 0 : index
    %c0_35 = arith.constant 0 : index
    %71 = vector.load %arg8[%c0_34, %c0_35] : memref<16x128xf32, #tpu.memory_space<vmem>>, vector<8x128xf32>
    tpu.vector_store %arg8[%c0_34, %c0_35], %70 {strides = array<i32>} : memref<16x128xf32, #tpu.memory_space<vmem>>, vector<8x128xf32>,
    %cst_36 = arith.constant dense<0.000000e+00> : vector<8x128xf32>
    %72 = tpu.matmul %67, %2, %cst_36 {dimension_numbers = #tpu.dot_dimension_numbers<[1], [0], [0], [1], [0, 0, 1, 1], [], []>} : vector<8x128xf32>, vector<128x128xf32>, vector<8x128xf32> -> vector<8x128xf32>
    %73 = vector.broadcast %5 : vector<1x128xf32> to vector<8x128xf32>
    %74 = arith.addf %72, %73 : vector<8x128xf32>
    %c8_37 = arith.constant 8 : index
    %c0_38 = arith.constant 0 : index
    %75 = vector.load %arg8[%c8_37, %c0_38] : memref<16x128xf32, #tpu.memory_space<vmem>>, vector<8x128xf32>
    tpu.vector_store %arg8[%c8_37, %c0_38], %74 {strides = array<i32>} : memref<16x128xf32, #tpu.memory_space<vmem>>, vector<8x128xf32>,
    return
  }
  func.func @transform_0(%arg0: i32) -> (i32, i32) {
    %c0_i32 = arith.constant 0 : i32
    %c0_i32_0 = arith.constant 0 : i32
    return %arg0, %c0_i32 : i32, i32
  }
  func.func @transform_1(%arg0: i32) -> (i32, i32) {
    %c0_i32 = arith.constant 0 : i32
    %c0_i32_0 = arith.constant 0 : i32
    %c0_i32_1 = arith.constant 0 : i32
    return %c0_i32, %c0_i32_0 : i32, i32
  }
  func.func @transform_2(%arg0: i32) -> (i32, i32) {
    %c0_i32 = arith.constant 0 : i32
    %c0_i32_0 = arith.constant 0 : i32
    %c0_i32_1 = arith.constant 0 : i32
    return %c0_i32, %c0_i32_0 : i32, i32
  }
  func.func @transform_3(%arg0: i32) -> (i32, i32) {
    %c0_i32 = arith.constant 0 : i32
    %c0_i32_0 = arith.constant 0 : i32
    %c0_i32_1 = arith.constant 0 : i32
    return %c0_i32, %c0_i32_0 : i32, i32
  }
  func.func @transform_4(%arg0: i32) -> (i32, i32) {
    %c0_i32 = arith.constant 0 : i32
    %c0_i32_0 = arith.constant 0 : i32
    %c0_i32_1 = arith.constant 0 : i32
    return %c0_i32, %c0_i32_0 : i32, i32
  }
  func.func @transform_5(%arg0: i32) -> (i32, i32) {
    %c0_i32 = arith.constant 0 : i32
    %c0_i32_0 = arith.constant 0 : i32
    %c0_i32_1 = arith.constant 0 : i32
    return %c0_i32, %c0_i32_0 : i32, i32
  }
  func.func @transform_6(%arg0: i32) -> (i32, i32) {
    %c0_i32 = arith.constant 0 : i32
    %c0_i32_0 = arith.constant 0 : i32
    %c0_i32_1 = arith.constant 0 : i32
    return %c0_i32, %c0_i32_0 : i32, i32
  }
  func.func @transform_7(%arg0: i32) -> (i32, i32) {
    %c0_i32 = arith.constant 0 : i32
    %c0_i32_0 = arith.constant 0 : i32
    return %arg0, %c0_i32 : i32, i32
  }
}

</mosaic_0001>

<bundles_post_ra>
// kernel: _mlp_forward_padded.1
= control target key start
LH: loop header
LB: loop body
LE: loop exit
PB: predicated region body
PF: predicated region fallthrough
CT: control target
= control target key end

     0   :  { %12 = vsyncpa [#allocation3], 0  ;;  %s3653_s0 = inlined_call_operand.vmem [shape: f32[16,8], index: 0, kind: input, shape index: {}]   ;;  %s3654_s1 = inlined_call_operand.vmem [shape: f32[8,128], index: 1, kind: input, shape index: {}]   ;;  %s3655_s2 = inlined_call_operand.vmem [shape: f32[1,128], index: 2, kind: input, shape index: {}]   ;;  %s3656_s3 = inlined_call_operand.hbm [shape: f32[128,128], index: 3, kind: input, shape index: {}]   ;;  %s3657_s4 = inlined_call_operand.vmem [shape: f32[1,128], index: 4, kind: input, shape index: {}]   ;;  %s3658_s5 = inlined_call_operand.hbm [shape: f32[128,128], index: 5, kind: input, shape index: {}]   ;;  %s3659_s6 = inlined_call_operand.vmem [shape: f32[1,128], index: 6, kind: input, shape index: {}]   ;;  %s3660_s7 = inlined_call_operand.hbm [shape: f32[16,128], index: 7, kind: output, shape index: {}]  }
   0x1   :  { %13 = vsyncpa [#allocation6], 0 }
   0x2   :  { %14 = vsyncpa [#allocation4], 0  ;;  %s2827_s24 = smov [#allocation2]  }
   0x3   :  { %s26_s25 = sshll.u32 %s2827_s24, 4  ;;  %s27_s25 = int_to_ptr.vmem [resolvable:$true] %s26_s25 }
   0x4   :  { %s2769_s26 = scalar_lea.vmem %s27_s25, 2048  ;;  %p2774_p1 = scmp.lt.s32.totalorder %s27_s25, %s27_s25 }
   0x5   :  { %p2770_p0 = scmp.ne.s32.totalorder %s27_s25, %s2769_s26  ;;  %p2775_p2 = scmp.lt.s32.totalorder %s2769_s26, %s2769_s26 }
   0x7   :  { %p2776_p3 = por %p2775_p2, %p2774_p1 }
   0x9   :  { %p2777_p4 = pnand %p2776_p3, %p2770_p0 }
   0xb   :  { %2780 = shalt.err (!%p2777_p4)
}
   0xc   :  { %s2828_s27 = smov 128   ;;  %s2829_s28 = smov 8  }
   0xd   :  { %32 = dma.hbm_to_vmem [thread:$0]  %s3656_s3, 2048, %s27_s25, [#allocation3], %s2828_s27, %s2828_s27, %s2829_s28  }
   0xe   :  { %s2830_s8 = smov [#allocation5]  }
   0xf   :  { %s40_s9 = sshll.u32 %s2830_s8, 4  ;;  %s41_s9 = int_to_ptr.vmem [resolvable:$true] %s40_s9 }
  0x10   :  { %s2789_s10 = scalar_lea.vmem %s41_s9, 2048  ;;  %p2794_p6 = scmp.lt.s32.totalorder %s41_s9, %s41_s9 }
  0x11   :  { %p2790_p5 = scmp.ne.s32.totalorder %s41_s9, %s2789_s10  ;;  %p2795_p7 = scmp.lt.s32.totalorder %s2789_s10, %s2789_s10 }
  0x13   :  { %p2796_p8 = por %p2795_p7, %p2794_p6 }
  0x15   :  { %p2797_p9 = pnand %p2796_p8, %p2790_p5 }
  0x17   :  { %2800 = shalt.err (!%p2797_p9)
}
  0x18   :  { %46 = dma.hbm_to_vmem [thread:$0]  %s3658_s5, 2048, %s41_s9, [#allocation6], %s2828_s27, %s2828_s27, %s2829_s28  }
  0x19   :  { %2821 = dma.done.wait [#allocation3], 2048  }
  0x1a   :  { %2822 = vsyncadd [#allocation3], 4294965248 }
  0x1b   :  { %2823 = dma.done.wait [#allocation6], 2048  }
  0x1c   :  { %2824 = vsyncadd [#allocation6], 4294965248  ;;  %v2831_v0 = vmov 0.0   ;;  %vm2832_vm0 = vmmov 0   ;;  %vm98_vm1 = vcmask 64512   ;;  %v55_v1 = vld [vmem:[%s3654_s1] sm:$0xff] }
  0x1d   :  { %2027 = vmatprep.subr.mxu0 %v2831_v0  ;;  %2032 = vmatprep.subr.mxu1 %v2831_v0  ;;  %v91_v2 = vld [vmem:[%s3653_s0] sm:$0xff]  ;;  %v172_v3 = vld [vmem:[%s3653_s0 + $0x8] sm:$0xff]  ;;  %v2901_v4 = vld [vmem:[#allocation2 + $0x78] sm:$0xff]  ;;  %s2833_s21 = smov [#allocation7]  }
  0x1e   :  { %2029 = vmatprep.mubr.msk.f32.mxu0 %vm2832_vm0, %v2831_v0  ;;  %2034 = vmatprep.mubr.msk.f32.mxu1 %vm2832_vm0, %v2831_v0  ;;  %v2905_v5 = vld [vmem:[#allocation2 + $0x70] sm:$0xff]  ;;  %v2911_v6 = vld [vmem:[#allocation2 + $0x68] sm:$0xff]  ;;  %v2917_v7 = vld [vmem:[#allocation2 + $0x60] sm:$0xff]  ;;  %s1665_s22 = sshll.u32 %s2833_s21, 4  ;;  %s1666_s22 = int_to_ptr.vmem [resolvable:$true] %s1665_s22 }
  0x1f   :  { %2028 = vmatpush3.msra.mxu0 %v55_v1  ;;  %2033 = vmatpush3.msra.mxu1 %v55_v1  ;;  %v2923_v8 = vld [vmem:[#allocation2 + $0x58] sm:$0xff]  ;;  %v2929_v9 = vld [vmem:[#allocation2 + $0x50] sm:$0xff]  ;;  %v2935_v10 = vld [vmem:[#allocation2 + $0x48] sm:$0xff]  ;;  %s2801_s23 = scalar_lea.vmem %s1666_s22, 256  ;;  %p2806_p11 = scmp.lt.s32.totalorder %s1666_s22, %s1666_s22 }
  0x20   :  { %2030 = vmatmul.mubr.msk.f32.vlgmr.msra.gmra.mxu0 %vm98_vm1, %v91_v2  ;;  %2035 = vmatmul.mubr.msk.f32.vlgmr.msra.gmra.mxu1 %vm98_vm1, %v172_v3  ;;  %v2941_v11 = vld [vmem:[#allocation2 + $0x40] sm:$0xff]  ;;  %v2947_v12 = vld [vmem:[#allocation2 + $0x38] sm:$0xff]  ;;  %v2953_v13 = vld [vmem:[#allocation2 + $0x30] sm:$0xff]  ;;  %p2802_p10 = scmp.ne.s32.totalorder %s1666_s22, %s2801_s23  ;;  %p2807_p12 = scmp.lt.s32.totalorder %s2801_s23, %s2801_s23 }
  0x21   :  { %2037 = vmatprep.subr.mxu0 %v2831_v0  ;;  %2072 = vmatprep.subr.mxu1 %v2831_v0  ;;  %v2959_v14 = vld [vmem:[#allocation2 + $0x28] sm:$0xff]  ;;  %v2965_v15 = vld [vmem:[#allocation2 + $0x20] sm:$0xff]  ;;  %v2971_v16 = vld [vmem:[#allocation2 + $0x18] sm:$0xff] }
  0x22   :  { %2038 = vmatpush3.msra.mxu0 %v2901_v4  ;;  %2073 = vmatpush3.msra.mxu1 %v2901_v4  ;;  %v2977_v17 = vld [vmem:[#allocation2 + $0x10] sm:$0xff]  ;;  %v2991_v18 = vld [vmem:[#allocation2 + $0x8] sm:$0xff]  ;;  %v2997_v19 = vld [vmem:[#allocation2] sm:$0xff]  ;;  %p2808_p13 = por %p2807_p12, %p2806_p11 }
  0x23   :  { %2039 = vmatprep.subr.mxu0 %v2831_v0  ;;  %2074 = vmatprep.subr.mxu1 %v2831_v0  ;;  %v1678_v20 = vld [vmem:[%s3655_s2] ss:$0 sm:$0xff]  ;;  %v3431_v1 = vld [vmem:[#allocation2 + $0x78] sm:$0xff]  ;;  %v3437_v2 = vld [vmem:[#allocation2 + $0x70] sm:$0xff] }
  0x24   :  { %2040 = vmatpush3.msra.mxu0 %v2905_v5  ;;  %2075 = vmatpush3.msra.mxu1 %v2905_v5  ;;  %v3077_v27 = vld [vmem:[%s3657_s4] ss:$0 sm:$0xff]  ;;  %v3443_v3 = vld [vmem:[#allocation2 + $0x68] sm:$0xff]  ;;  %p2809_p0 = pnand %p2808_p13, %p2802_p10 }
  0x25   :  { %2041 = vmatprep.subr.mxu0 %v2831_v0  ;;  %2076 = vmatprep.subr.mxu1 %v2831_v0 }
  0x26   :  { %2042 = vmatpush3.msra.mxu0 %v2911_v6  ;;  %2077 = vmatpush3.msra.mxu1 %v2911_v6 }
  0x27   :  { %2043 = vmatprep.subr.mxu0 %v2831_v0  ;;  %2078 = vmatprep.subr.mxu1 %v2831_v0 }
  0x28   :  { %2044 = vmatpush3.msra.mxu0 %v2917_v7  ;;  %2079 = vmatpush3.msra.mxu1 %v2917_v7 }
  0x29   :  { %2045 = vmatprep.subr.mxu0 %v2831_v0  ;;  %2080 = vmatprep.subr.mxu1 %v2831_v0 }
  0x2a   :  { %2046 = vmatpush3.msra.mxu0 %v2923_v8  ;;  %2081 = vmatpush3.msra.mxu1 %v2923_v8 }
  0x2b   :  { %2047 = vmatprep.subr.mxu0 %v2831_v0  ;;  %2082 = vmatprep.subr.mxu1 %v2831_v0 }
  0x2c   :  { %2048 = vmatpush3.msra.mxu0 %v2929_v9  ;;  %2083 = vmatpush3.msra.mxu1 %v2929_v9 }
  0x2d   :  { %2049 = vmatprep.subr.mxu0 %v2831_v0  ;;  %2084 = vmatprep.subr.mxu1 %v2831_v0 }
  0x2e   :  { %2050 = vmatpush3.msra.mxu0 %v2935_v10  ;;  %2085 = vmatpush3.msra.mxu1 %v2935_v10 }
  0x2f   :  { %2051 = vmatprep.subr.mxu0 %v2831_v0  ;;  %2086 = vmatprep.subr.mxu1 %v2831_v0 }
  0x30   :  { %2052 = vmatpush3.msra.mxu0 %v2941_v11  ;;  %2087 = vmatpush3.msra.mxu1 %v2941_v11 }
  0x31   :  { %2053 = vmatprep.subr.mxu0 %v2831_v0  ;;  %2088 = vmatprep.subr.mxu1 %v2831_v0 }
  0x32   :  { %2054 = vmatpush3.msra.mxu0 %v2947_v12  ;;  %2089 = vmatpush3.msra.mxu1 %v2947_v12 }
  0x33   :  { %2055 = vmatprep.subr.mxu0 %v2831_v0  ;;  %2090 = vmatprep.subr.mxu1 %v2831_v0 }
  0x34   :  { %2056 = vmatpush3.msra.mxu0 %v2953_v13  ;;  %2091 = vmatpush3.msra.mxu1 %v2953_v13 }
  0x35   :  { %2057 = vmatprep.subr.mxu0 %v2831_v0  ;;  %2092 = vmatprep.subr.mxu1 %v2831_v0 }
  0x36   :  { %2058 = vmatpush3.msra.mxu0 %v2959_v14  ;;  %2093 = vmatpush3.msra.mxu1 %v2959_v14 }
  0x37   :  { %2059 = vmatprep.subr.mxu0 %v2831_v0  ;;  %2094 = vmatprep.subr.mxu1 %v2831_v0 }
  0x38   :  { %2060 = vmatpush3.msra.mxu0 %v2965_v15  ;;  %2095 = vmatpush3.msra.mxu1 %v2965_v15 }
  0x39   :  { %2061 = vmatprep.subr.mxu0 %v2831_v0  ;;  %2096 = vmatprep.subr.mxu1 %v2831_v0 }
  0x3a   :  { %2062 = vmatpush3.msra.mxu0 %v2971_v16  ;;  %2097 = vmatpush3.msra.mxu1 %v2971_v16 }
  0x3b   :  { %2063 = vmatprep.subr.mxu0 %v2831_v0  ;;  %2098 = vmatprep.subr.mxu1 %v2831_v0 }
  0x3c   :  { %2064 = vmatpush3.msra.mxu0 %v2977_v17  ;;  %2099 = vmatpush3.msra.mxu1 %v2977_v17 }
  0x3d   :  { %2065 = vmatprep.subr.mxu0 %v2831_v0  ;;  %2100 = vmatprep.subr.mxu1 %v2831_v0 }
  0x3e   :  { %2069 = vmatprep.mubr.msk.f32.mxu0 %vm2832_vm0, %v2831_v0  ;;  %2104 = vmatprep.mubr.msk.f32.mxu1 %vm2832_vm0, %v2831_v0 }
  0x3f   :  { %2066 = vmatpush3.msra.mxu0 %v2991_v18  ;;  %2101 = vmatpush3.msra.mxu1 %v2991_v18 }
  0x40   :  { %2067 = vmatprep.subr.mxu0 %v2831_v0  ;;  %2102 = vmatprep.subr.mxu1 %v2831_v0 }
  0x41   :  { %2068 = vmatpush3.msra.mxu0 %v2997_v19  ;;  %2103 = vmatpush3.msra.mxu1 %v2997_v19 }
  0x42   :  { %2107 = vmatprep.subr.mxu0 %v2831_v0  ;;  %2142 = vmatprep.subr.mxu1 %v2831_v0 }
  0xe0   :  { %v168_v21 = vpop.f32.mrf.mxu0  ;;  %v242_v22 = vpop.f32.mrf.mxu1 }
  0xe1   :  { %v169_v23 = vadd.f32 %v1678_v20, %v168_v21  ;;  %v243_v24 = vadd.f32 %v1678_v20, %v242_v22 }
  0xe2   :  { %v2031_v25 = vpop.f32.mrf.mxu0  ;;  %v2036_v26 = vpop.f32.mrf.mxu1 }
  0xe3   :  { %2070 = vmatmul.mubr.f32.vlgmr.msra.gmra.mxu0 %v169_v23  ;;  %2105 = vmatmul.mubr.f32.vlgmr.msra.gmra.mxu1 %v243_v24  ;;  %v3604_v25 = vld [vmem:[%s3657_s4] ss:$0 sm:$0xff] }
  0xe4   :  { %2108 = vmatpush3.msra.mxu0 %v2901_v4  ;;  %2143 = vmatpush3.msra.mxu1 %v2901_v4 }
  0xe5   :  { %2109 = vmatprep.subr.mxu0 %v2831_v0  ;;  %2144 = vmatprep.subr.mxu1 %v2831_v0 }
  0xe6   :  { %2110 = vmatpush3.msra.mxu0 %v2905_v5  ;;  %2145 = vmatpush3.msra.mxu1 %v2905_v5 }
  0xe7   :  { %2111 = vmatprep.subr.mxu0 %v2831_v0  ;;  %2146 = vmatprep.subr.mxu1 %v2831_v0 }
  0xe8   :  { %2112 = vmatpush3.msra.mxu0 %v2911_v6  ;;  %2147 = vmatpush3.msra.mxu1 %v2911_v6 }
  0xe9   :  { %2113 = vmatprep.subr.mxu0 %v2831_v0  ;;  %2148 = vmatprep.subr.mxu1 %v2831_v0 }
  0xea   :  { %2114 = vmatpush3.msra.mxu0 %v2917_v7  ;;  %2149 = vmatpush3.msra.mxu1 %v2917_v7 }
  0xeb   :  { %2115 = vmatprep.subr.mxu0 %v2831_v0  ;;  %2150 = vmatprep.subr.mxu1 %v2831_v0 }
  0xec   :  { %2116 = vmatpush3.msra.mxu0 %v2923_v8  ;;  %2151 = vmatpush3.msra.mxu1 %v2923_v8 }
  0xed   :  { %2117 = vmatprep.subr.mxu0 %v2831_v0  ;;  %2152 = vmatprep.subr.mxu1 %v2831_v0 }
  0xee   :  { %2118 = vmatpush3.msra.mxu0 %v2929_v9  ;;  %2153 = vmatpush3.msra.mxu1 %v2929_v9 }
  0xef   :  { %2119 = vmatprep.subr.mxu0 %v2831_v0  ;;  %2154 = vmatprep.subr.mxu1 %v2831_v0 }
  0xf0   :  { %2120 = vmatpush3.msra.mxu0 %v2935_v10  ;;  %2155 = vmatpush3.msra.mxu1 %v2935_v10 }
  0xf1   :  { %2121 = vmatprep.subr.mxu0 %v2831_v0  ;;  %2156 = vmatprep.subr.mxu1 %v2831_v0 }
  0xf2   :  { %2122 = vmatpush3.msra.mxu0 %v2941_v11  ;;  %2157 = vmatpush3.msra.mxu1 %v2941_v11 }
  0xf3   :  { %2123 = vmatprep.subr.mxu0 %v2831_v0  ;;  %2158 = vmatprep.subr.mxu1 %v2831_v0 }
  0xf4   :  { %2124 = vmatpush3.msra.mxu0 %v2947_v12  ;;  %2159 = vmatpush3.msra.mxu1 %v2947_v12 }
  0xf5   :  { %2125 = vmatprep.subr.mxu0 %v2831_v0  ;;  %2160 = vmatprep.subr.mxu1 %v2831_v0 }
  0xf6   :  { %2126 = vmatpush3.msra.mxu0 %v2953_v13  ;;  %2161 = vmatpush3.msra.mxu1 %v2953_v13 }
  0xf7   :  { %2127 = vmatprep.subr.mxu0 %v2831_v0  ;;  %2162 = vmatprep.subr.mxu1 %v2831_v0 }
  0xf8   :  { %2128 = vmatpush3.msra.mxu0 %v2959_v14  ;;  %2163 = vmatpush3.msra.mxu1 %v2959_v14 }
  0xf9   :  { %2129 = vmatprep.subr.mxu0 %v2831_v0  ;;  %2164 = vmatprep.subr.mxu1 %v2831_v0 }
  0xfa   :  { %2130 = vmatpush3.msra.mxu0 %v2965_v15  ;;  %2165 = vmatpush3.msra.mxu1 %v2965_v15 }
  0xfb   :  { %2131 = vmatprep.subr.mxu0 %v2831_v0  ;;  %2166 = vmatprep.subr.mxu1 %v2831_v0 }
  0xfc   :  { %2132 = vmatpush3.msra.mxu0 %v2971_v16  ;;  %2167 = vmatpush3.msra.mxu1 %v2971_v16 }
  0xfd   :  { %2133 = vmatprep.subr.mxu0 %v2831_v0  ;;  %2168 = vmatprep.subr.mxu1 %v2831_v0 }
  0xfe   :  { %2134 = vmatpush3.msra.mxu0 %v2977_v17  ;;  %2169 = vmatpush3.msra.mxu1 %v2977_v17 }
  0xff   :  { %2135 = vmatprep.subr.mxu0 %v2831_v0  ;;  %2170 = vmatprep.subr.mxu1 %v2831_v0 }
 0x100   :  { %2136 = vmatpush3.msra.mxu0 %v2991_v18  ;;  %2171 = vmatpush3.msra.mxu1 %v2991_v18 }
 0x101   :  { %2137 = vmatprep.subr.mxu0 %v2831_v0  ;;  %2172 = vmatprep.subr.mxu1 %v2831_v0 }
 0x102   :  { %2138 = vmatpush3.msra.mxu0 %v2997_v19  ;;  %2139 = vmatprep.mubr.msk.f32.mxu0 %vm2832_vm0, %v2831_v0 }
 0x103   :  { %2173 = vmatpush3.msra.mxu1 %v2997_v19  ;;  %2174 = vmatprep.mubr.msk.f32.mxu1 %vm2832_vm0, %v2831_v0 }
 0x104   :  { %2177 = vmatprep.subr.mxu0 %v2831_v0  ;;  %2212 = vmatprep.subr.mxu1 %v2831_v0 }
 0x1a3   :  { %v318_v28 = vpop.f32.mrf.mxu0  ;;  %v388_v29 = vpop.f32.mrf.mxu1 }
 0x1a4   :  { %v319_v30 = vadd.f32 %v3077_v27, %v318_v28  ;;  %v389_v31 = vadd.f32 %v3077_v27, %v388_v29  ;;  %v87_v28 = vld [vmem:[#allocation5 + $0x78] sm:$0xff] }
 0x1a5   :  { %v2071_v32 = vpop.f32.mrf.mxu0  ;;  %v2106_v33 = vpop.f32.mrf.mxu1 }
 0x1a6   :  { %2140 = vmatmul.mubr.f32.vlgmr.msra.gmra.mxu0 %v319_v30  ;;  %2175 = vmatmul.mubr.f32.vlgmr.msra.gmra.mxu1 %v389_v31  ;;  %v86_v31 = vld [vmem:[#allocation5 + $0x70] sm:$0xff]  ;;  %v85_v32 = vld [vmem:[#allocation5 + $0x68] sm:$0xff]  ;;  %v84_v33 = vld [vmem:[#allocation5 + $0x60] sm:$0xff] }
 0x1a7   :  { %2178 = vmatpush3.msra.mxu0 %v2901_v4  ;;  %2213 = vmatpush3.msra.mxu1 %v2901_v4 }
 0x1a8   :  { %2179 = vmatprep.subr.mxu0 %v2831_v0  ;;  %2214 = vmatprep.subr.mxu1 %v2831_v0 }
 0x1a9   :  { %2180 = vmatpush3.msra.mxu0 %v2905_v5  ;;  %2215 = vmatpush3.msra.mxu1 %v2905_v5 }
 0x1aa   :  { %2181 = vmatprep.subr.mxu0 %v2831_v0  ;;  %2216 = vmatprep.subr.mxu1 %v2831_v0 }
 0x1ab   :  { %2182 = vmatpush3.msra.mxu0 %v2911_v6  ;;  %2217 = vmatpush3.msra.mxu1 %v2911_v6 }
 0x1ac   :  { %2183 = vmatprep.subr.mxu0 %v2831_v0  ;;  %2218 = vmatprep.subr.mxu1 %v2831_v0 }
 0x1ad   :  { %2184 = vmatpush3.msra.mxu0 %v2917_v7  ;;  %2219 = vmatpush3.msra.mxu1 %v2917_v7 }
 0x1ae   :  { %2185 = vmatprep.subr.mxu0 %v2831_v0  ;;  %2220 = vmatprep.subr.mxu1 %v2831_v0 }
 0x1af   :  { %2186 = vmatpush3.msra.mxu0 %v2923_v8  ;;  %2221 = vmatpush3.msra.mxu1 %v2923_v8 }
 0x1b0   :  { %2187 = vmatprep.subr.mxu0 %v2831_v0  ;;  %2222 = vmatprep.subr.mxu1 %v2831_v0 }
 0x1b1   :  { %2188 = vmatpush3.msra.mxu0 %v2929_v9  ;;  %2223 = vmatpush3.msra.mxu1 %v2929_v9 }
 0x1b2   :  { %2189 = vmatprep.subr.mxu0 %v2831_v0  ;;  %2224 = vmatprep.subr.mxu1 %v2831_v0 }
 0x1b3   :  { %2190 = vmatpush3.msra.mxu0 %v2935_v10  ;;  %2225 = vmatpush3.msra.mxu1 %v2935_v10 }
 0x1b4   :  { %2191 = vmatprep.subr.mxu0 %v2831_v0  ;;  %2226 = vmatprep.subr.mxu1 %v2831_v0 }
 0x1b5   :  { %2192 = vmatpush3.msra.mxu0 %v2941_v11  ;;  %2227 = vmatpush3.msra.mxu1 %v2941_v11 }
 0x1b6   :  { %2193 = vmatprep.subr.mxu0 %v2831_v0  ;;  %2228 = vmatprep.subr.mxu1 %v2831_v0 }
 0x1b7   :  { %2194 = vmatpush3.msra.mxu0 %v2947_v12  ;;  %2229 = vmatpush3.msra.mxu1 %v2947_v12 }
 0x1b8   :  { %2195 = vmatprep.subr.mxu0 %v2831_v0  ;;  %2230 = vmatprep.subr.mxu1 %v2831_v0 }
 0x1b9   :  { %2196 = vmatpush3.msra.mxu0 %v2953_v13  ;;  %2231 = vmatpush3.msra.mxu1 %v2953_v13 }
 0x1ba   :  { %2197 = vmatprep.subr.mxu0 %v2831_v0  ;;  %2232 = vmatprep.subr.mxu1 %v2831_v0 }
 0x1bb   :  { %2198 = vmatpush3.msra.mxu0 %v2959_v14  ;;  %2233 = vmatpush3.msra.mxu1 %v2959_v14 }
 0x1bc   :  { %2199 = vmatprep.subr.mxu0 %v2831_v0  ;;  %2234 = vmatprep.subr.mxu1 %v2831_v0 }
 0x1bd   :  { %2200 = vmatpush3.msra.mxu0 %v2965_v15  ;;  %2235 = vmatpush3.msra.mxu1 %v2965_v15 }
 0x1be   :  { %2201 = vmatprep.subr.mxu0 %v2831_v0  ;;  %2236 = vmatprep.subr.mxu1 %v2831_v0 }
 0x1bf   :  { %2202 = vmatpush3.msra.mxu0 %v2971_v16  ;;  %2237 = vmatpush3.msra.mxu1 %v2971_v16 }
 0x1c0   :  { %2203 = vmatprep.subr.mxu0 %v2831_v0  ;;  %2238 = vmatprep.subr.mxu1 %v2831_v0 }
 0x1c1   :  { %2204 = vmatpush3.msra.mxu0 %v2977_v17  ;;  %2239 = vmatpush3.msra.mxu1 %v2977_v17 }
 0x1c2   :  { %2205 = vmatprep.subr.mxu0 %v2831_v0  ;;  %2240 = vmatprep.subr.mxu1 %v2831_v0 }
 0x1c3   :  { %2206 = vmatpush3.msra.mxu0 %v2991_v18  ;;  %2241 = vmatpush3.msra.mxu1 %v2991_v18 }
 0x1c4   :  { %2207 = vmatprep.subr.mxu0 %v2831_v0  ;;  %2242 = vmatprep.subr.mxu1 %v2831_v0 }
 0x1c5   :  { %2208 = vmatpush3.msra.mxu0 %v2997_v19  ;;  %2209 = vmatprep.mubr.msk.f32.mxu0 %vm2832_vm0, %v2831_v0 }
 0x1c6   :  { %2243 = vmatpush3.msra.mxu1 %v2997_v19  ;;  %2244 = vmatprep.mubr.msk.f32.mxu1 %vm2832_vm0, %v2831_v0 }
 0x1c7   :  { %2247 = vmatprep.subr.mxu0 %v2831_v0  ;;  %2282 = vmatprep.subr.mxu1 %v2831_v0 }
 0x266   :  { %v458_v34 = vpop.f32.mrf.mxu0  ;;  %v528_v35 = vpop.f32.mrf.mxu1 }
 0x267   :  { %v459_v36 = vadd.f32 %v3077_v27, %v458_v34  ;;  %v529_v37 = vadd.f32 %v3077_v27, %v528_v35  ;;  %v83_v34 = vld [vmem:[#allocation5 + $0x58] sm:$0xff]  ;;  %v82_v35 = vld [vmem:[#allocation5 + $0x50] sm:$0xff] }
 0x268   :  { %v2141_v38 = vpop.f32.mrf.mxu0  ;;  %v2176_v39 = vpop.f32.mrf.mxu1 }
 0x269   :  { %2210 = vmatmul.mubr.f32.vlgmr.msra.gmra.mxu0 %v459_v36  ;;  %2245 = vmatmul.mubr.f32.vlgmr.msra.gmra.mxu1 %v529_v37  ;;  %v81_v36 = vld [vmem:[#allocation5 + $0x48] sm:$0xff]  ;;  %v80_v37 = vld [vmem:[#allocation5 + $0x40] sm:$0xff]  ;;  %v79_v38 = vld [vmem:[#allocation5 + $0x38] sm:$0xff] }
 0x26a   :  { %2248 = vmatpush3.msra.mxu0 %v2901_v4  ;;  %2283 = vmatpush3.msra.mxu1 %v2901_v4  ;;  %v78_v39 = vld [vmem:[#allocation5 + $0x30] sm:$0xff] }
 0x26b   :  { %2249 = vmatprep.subr.mxu0 %v2831_v0  ;;  %2284 = vmatprep.subr.mxu1 %v2831_v0 }
 0x26c   :  { %2250 = vmatpush3.msra.mxu0 %v2905_v5  ;;  %2285 = vmatpush3.msra.mxu1 %v2905_v5 }
 0x26d   :  { %2251 = vmatprep.subr.mxu0 %v2831_v0  ;;  %2286 = vmatprep.subr.mxu1 %v2831_v0 }
 0x26e   :  { %2252 = vmatpush3.msra.mxu0 %v2911_v6  ;;  %2287 = vmatpush3.msra.mxu1 %v2911_v6 }
 0x26f   :  { %2253 = vmatprep.subr.mxu0 %v2831_v0  ;;  %2288 = vmatprep.subr.mxu1 %v2831_v0 }
 0x270   :  { %2254 = vmatpush3.msra.mxu0 %v2917_v7  ;;  %2289 = vmatpush3.msra.mxu1 %v2917_v7 }
 0x271   :  { %2255 = vmatprep.subr.mxu0 %v2831_v0  ;;  %2290 = vmatprep.subr.mxu1 %v2831_v0 }
 0x272   :  { %2256 = vmatpush3.msra.mxu0 %v2923_v8  ;;  %2291 = vmatpush3.msra.mxu1 %v2923_v8 }
 0x273   :  { %2257 = vmatprep.subr.mxu0 %v2831_v0  ;;  %2292 = vmatprep.subr.mxu1 %v2831_v0 }
 0x274   :  { %2258 = vmatpush3.msra.mxu0 %v2929_v9  ;;  %2293 = vmatpush3.msra.mxu1 %v2929_v9 }
 0x275   :  { %2259 = vmatprep.subr.mxu0 %v2831_v0  ;;  %2294 = vmatprep.subr.mxu1 %v2831_v0 }
 0x276   :  { %2260 = vmatpush3.msra.mxu0 %v2935_v10  ;;  %2295 = vmatpush3.msra.mxu1 %v2935_v10 }
 0x277   :  { %2261 = vmatprep.subr.mxu0 %v2831_v0  ;;  %2296 = vmatprep.subr.mxu1 %v2831_v0 }
 0x278   :  { %2262 = vmatpush3.msra.mxu0 %v2941_v11  ;;  %2297 = vmatpush3.msra.mxu1 %v2941_v11 }
 0x279   :  { %2263 = vmatprep.subr.mxu0 %v2831_v0  ;;  %2298 = vmatprep.subr.mxu1 %v2831_v0 }
 0x27a   :  { %2264 = vmatpush3.msra.mxu0 %v2947_v12  ;;  %2299 = vmatpush3.msra.mxu1 %v2947_v12 }
 0x27b   :  { %2265 = vmatprep.subr.mxu0 %v2831_v0  ;;  %2300 = vmatprep.subr.mxu1 %v2831_v0 }
 0x27c   :  { %2266 = vmatpush3.msra.mxu0 %v2953_v13  ;;  %2301 = vmatpush3.msra.mxu1 %v2953_v13 }
 0x27d   :  { %2267 = vmatprep.subr.mxu0 %v2831_v0  ;;  %2302 = vmatprep.subr.mxu1 %v2831_v0 }
 0x27e   :  { %2268 = vmatpush3.msra.mxu0 %v2959_v14  ;;  %2303 = vmatpush3.msra.mxu1 %v2959_v14 }
 0x27f   :  { %2269 = vmatprep.subr.mxu0 %v2831_v0  ;;  %2304 = vmatprep.subr.mxu1 %v2831_v0 }
 0x280   :  { %2270 = vmatpush3.msra.mxu0 %v2965_v15  ;;  %2305 = vmatpush3.msra.mxu1 %v2965_v15 }
 0x281   :  { %2271 = vmatprep.subr.mxu0 %v2831_v0  ;;  %2306 = vmatprep.subr.mxu1 %v2831_v0 }
 0x282   :  { %2272 = vmatpush3.msra.mxu0 %v2971_v16  ;;  %2307 = vmatpush3.msra.mxu1 %v2971_v16 }
 0x283   :  { %2273 = vmatprep.subr.mxu0 %v2831_v0  ;;  %2308 = vmatprep.subr.mxu1 %v2831_v0 }
 0x284   :  { %2274 = vmatpush3.msra.mxu0 %v2977_v17  ;;  %2309 = vmatpush3.msra.mxu1 %v2977_v17 }
 0x285   :  { %2275 = vmatprep.subr.mxu0 %v2831_v0  ;;  %2310 = vmatprep.subr.mxu1 %v2831_v0 }
 0x286   :  { %2276 = vmatpush3.msra.mxu0 %v2991_v18  ;;  %2311 = vmatpush3.msra.mxu1 %v2991_v18 }
 0x287   :  { %2277 = vmatprep.subr.mxu0 %v2831_v0  ;;  %2312 = vmatprep.subr.mxu1 %v2831_v0 }
 0x288   :  { %2278 = vmatpush3.msra.mxu0 %v2997_v19  ;;  %2279 = vmatprep.mubr.msk.f32.mxu0 %vm2832_vm0, %v2831_v0 }
 0x289   :  { %2313 = vmatpush3.msra.mxu1 %v2997_v19  ;;  %2314 = vmatprep.mubr.msk.f32.mxu1 %vm2832_vm0, %v2831_v0 }
 0x28a   :  { %2317 = vmatprep.subr.mxu0 %v2831_v0  ;;  %2352 = vmatprep.subr.mxu1 %v2831_v0 }
 0x329   :  { %v598_v40 = vpop.f32.mrf.mxu0  ;;  %v668_v41 = vpop.f32.mrf.mxu1 }
 0x32a   :  { %v599_v42 = vadd.f32 %v3077_v27, %v598_v40  ;;  %v669_v43 = vadd.f32 %v3077_v27, %v668_v41  ;;  %v77_v40 = vld [vmem:[#allocation5 + $0x28] sm:$0xff]  ;;  %v76_v41 = vld [vmem:[#allocation5 + $0x20] sm:$0xff] }
 0x32b   :  { %v2211_v44 = vpop.f32.mrf.mxu0  ;;  %v2246_v45 = vpop.f32.mrf.mxu1 }
 0x32c   :  { %2280 = vmatmul.mubr.f32.vlgmr.msra.gmra.mxu0 %v599_v42  ;;  %2315 = vmatmul.mubr.f32.vlgmr.msra.gmra.mxu1 %v669_v43  ;;  %v75_v42 = vld [vmem:[#allocation5 + $0x18] sm:$0xff]  ;;  %v74_v43 = vld [vmem:[#allocation5 + $0x10] sm:$0xff]  ;;  %v73_v44 = vld [vmem:[#allocation5 + $0x8] sm:$0xff] }
 0x32d   :  { %2318 = vmatpush3.msra.mxu0 %v2901_v4  ;;  %2353 = vmatpush3.msra.mxu1 %v2901_v4  ;;  %v72_v45 = vld [vmem:[#allocation5] sm:$0xff] }
 0x32e   :  { %2319 = vmatprep.subr.mxu0 %v2831_v0  ;;  %2354 = vmatprep.subr.mxu1 %v2831_v0 }
 0x32f   :  { %2320 = vmatpush3.msra.mxu0 %v2905_v5  ;;  %2355 = vmatpush3.msra.mxu1 %v2905_v5 }
 0x330   :  { %2321 = vmatprep.subr.mxu0 %v2831_v0  ;;  %2356 = vmatprep.subr.mxu1 %v2831_v0 }
 0x331   :  { %2322 = vmatpush3.msra.mxu0 %v2911_v6  ;;  %2357 = vmatpush3.msra.mxu1 %v2911_v6 }
 0x332   :  { %2323 = vmatprep.subr.mxu0 %v2831_v0  ;;  %2358 = vmatprep.subr.mxu1 %v2831_v0 }
 0x333   :  { %2324 = vmatpush3.msra.mxu0 %v2917_v7  ;;  %2359 = vmatpush3.msra.mxu1 %v2917_v7 }
 0x334   :  { %2325 = vmatprep.subr.mxu0 %v2831_v0  ;;  %2360 = vmatprep.subr.mxu1 %v2831_v0 }
 0x335   :  { %2326 = vmatpush3.msra.mxu0 %v2923_v8  ;;  %2361 = vmatpush3.msra.mxu1 %v2923_v8 }
 0x336   :  { %2327 = vmatprep.subr.mxu0 %v2831_v0  ;;  %2362 = vmatprep.subr.mxu1 %v2831_v0 }
 0x337   :  { %2328 = vmatpush3.msra.mxu0 %v2929_v9  ;;  %2363 = vmatpush3.msra.mxu1 %v2929_v9 }
 0x338   :  { %2329 = vmatprep.subr.mxu0 %v2831_v0  ;;  %2364 = vmatprep.subr.mxu1 %v2831_v0 }
 0x339   :  { %2330 = vmatpush3.msra.mxu0 %v2935_v10  ;;  %2365 = vmatpush3.msra.mxu1 %v2935_v10 }
 0x33a   :  { %2331 = vmatprep.subr.mxu0 %v2831_v0  ;;  %2366 = vmatprep.subr.mxu1 %v2831_v0 }
 0x33b   :  { %2332 = vmatpush3.msra.mxu0 %v2941_v11  ;;  %2367 = vmatpush3.msra.mxu1 %v2941_v11 }
 0x33c   :  { %2333 = vmatprep.subr.mxu0 %v2831_v0  ;;  %2368 = vmatprep.subr.mxu1 %v2831_v0 }
 0x33d   :  { %2334 = vmatpush3.msra.mxu0 %v2947_v12  ;;  %2369 = vmatpush3.msra.mxu1 %v2947_v12 }
 0x33e   :  { %2335 = vmatprep.subr.mxu0 %v2831_v0  ;;  %2370 = vmatprep.subr.mxu1 %v2831_v0 }
 0x33f   :  { %2336 = vmatpush3.msra.mxu0 %v2953_v13  ;;  %2371 = vmatpush3.msra.mxu1 %v2953_v13 }
 0x340   :  { %2337 = vmatprep.subr.mxu0 %v2831_v0  ;;  %2372 = vmatprep.subr.mxu1 %v2831_v0 }
 0x341   :  { %2338 = vmatpush3.msra.mxu0 %v2959_v14  ;;  %2373 = vmatpush3.msra.mxu1 %v2959_v14 }
 0x342   :  { %2339 = vmatprep.subr.mxu0 %v2831_v0  ;;  %2374 = vmatprep.subr.mxu1 %v2831_v0 }
 0x343   :  { %2340 = vmatpush3.msra.mxu0 %v2965_v15  ;;  %2375 = vmatpush3.msra.mxu1 %v2965_v15 }
 0x344   :  { %2341 = vmatprep.subr.mxu0 %v2831_v0  ;;  %2376 = vmatprep.subr.mxu1 %v2831_v0 }
 0x345   :  { %2342 = vmatpush3.msra.mxu0 %v2971_v16  ;;  %2377 = vmatpush3.msra.mxu1 %v2971_v16 }
 0x346   :  { %2343 = vmatprep.subr.mxu0 %v2831_v0  ;;  %2378 = vmatprep.subr.mxu1 %v2831_v0 }
 0x347   :  { %2344 = vmatpush3.msra.mxu0 %v2977_v17  ;;  %2379 = vmatpush3.msra.mxu1 %v2977_v17 }
 0x348   :  { %2345 = vmatprep.subr.mxu0 %v2831_v0  ;;  %2380 = vmatprep.subr.mxu1 %v2831_v0 }
 0x349   :  { %2346 = vmatpush3.msra.mxu0 %v2991_v18  ;;  %2381 = vmatpush3.msra.mxu1 %v2991_v18 }
 0x34a   :  { %2347 = vmatprep.subr.mxu0 %v2831_v0  ;;  %2382 = vmatprep.subr.mxu1 %v2831_v0 }
 0x34b   :  { %2348 = vmatpush3.msra.mxu0 %v2997_v19  ;;  %2349 = vmatprep.mubr.msk.f32.mxu0 %vm2832_vm0, %v2831_v0 }
 0x34c   :  { %2383 = vmatpush3.msra.mxu1 %v2997_v19  ;;  %2384 = vmatprep.mubr.msk.f32.mxu1 %vm2832_vm0, %v2831_v0 }
 0x34d   :  { %2387 = vmatprep.subr.mxu0 %v2831_v0  ;;  %2422 = vmatprep.subr.mxu1 %v2831_v0 }
 0x3ec   :  { %v738_v46 = vpop.f32.mrf.mxu0  ;;  %v808_v47 = vpop.f32.mrf.mxu1 }
 0x3ed   :  { %v739_v48 = vadd.f32 %v3077_v27, %v738_v46  ;;  %v809_v49 = vadd.f32 %v3077_v27, %v808_v47 }
 0x3ee   :  { %v2281_v50 = vpop.f32.mrf.mxu0  ;;  %v2316_v51 = vpop.f32.mrf.mxu1 }
 0x3ef   :  { %2350 = vmatmul.mubr.f32.vlgmr.msra.gmra.mxu0 %v739_v48  ;;  %2385 = vmatmul.mubr.f32.vlgmr.msra.gmra.mxu1 %v809_v49 }
 0x3f0   :  { %2388 = vmatpush3.msra.mxu0 %v2901_v4  ;;  %2423 = vmatpush3.msra.mxu1 %v2901_v4 }
 0x3f1   :  { %2389 = vmatprep.subr.mxu0 %v2831_v0  ;;  %2424 = vmatprep.subr.mxu1 %v2831_v0 }
 0x3f2   :  { %2390 = vmatpush3.msra.mxu0 %v2905_v5  ;;  %2425 = vmatpush3.msra.mxu1 %v2905_v5 }
 0x3f3   :  { %2391 = vmatprep.subr.mxu0 %v2831_v0  ;;  %2426 = vmatprep.subr.mxu1 %v2831_v0 }
 0x3f4   :  { %2392 = vmatpush3.msra.mxu0 %v2911_v6  ;;  %2427 = vmatpush3.msra.mxu1 %v2911_v6 }
 0x3f5   :  { %2393 = vmatprep.subr.mxu0 %v2831_v0  ;;  %2428 = vmatprep.subr.mxu1 %v2831_v0 }
 0x3f6   :  { %2394 = vmatpush3.msra.mxu0 %v2917_v7  ;;  %2429 = vmatpush3.msra.mxu1 %v2917_v7 }
 0x3f7   :  { %2395 = vmatprep.subr.mxu0 %v2831_v0  ;;  %2430 = vmatprep.subr.mxu1 %v2831_v0 }
 0x3f8   :  { %2396 = vmatpush3.msra.mxu0 %v2923_v8  ;;  %2431 = vmatpush3.msra.mxu1 %v2923_v8 }
 0x3f9   :  { %2397 = vmatprep.subr.mxu0 %v2831_v0  ;;  %2432 = vmatprep.subr.mxu1 %v2831_v0 }
 0x3fa   :  { %2398 = vmatpush3.msra.mxu0 %v2929_v9  ;;  %2433 = vmatpush3.msra.mxu1 %v2929_v9 }
 0x3fb   :  { %2399 = vmatprep.subr.mxu0 %v2831_v0  ;;  %2434 = vmatprep.subr.mxu1 %v2831_v0 }
 0x3fc   :  { %2400 = vmatpush3.msra.mxu0 %v2935_v10  ;;  %2435 = vmatpush3.msra.mxu1 %v2935_v10 }
 0x3fd   :  { %2401 = vmatprep.subr.mxu0 %v2831_v0  ;;  %2436 = vmatprep.subr.mxu1 %v2831_v0 }
 0x3fe   :  { %2402 = vmatpush3.msra.mxu0 %v2941_v11  ;;  %2437 = vmatpush3.msra.mxu1 %v2941_v11 }
 0x3ff   :  { %2403 = vmatprep.subr.mxu0 %v2831_v0  ;;  %2438 = vmatprep.subr.mxu1 %v2831_v0 }
 0x400   :  { %2404 = vmatpush3.msra.mxu0 %v2947_v12  ;;  %2439 = vmatpush3.msra.mxu1 %v2947_v12 }
 0x401   :  { %2405 = vmatprep.subr.mxu0 %v2831_v0  ;;  %2440 = vmatprep.subr.mxu1 %v2831_v0 }
 0x402   :  { %2406 = vmatpush3.msra.mxu0 %v2953_v13  ;;  %2441 = vmatpush3.msra.mxu1 %v2953_v13 }
 0x403   :  { %2407 = vmatprep.subr.mxu0 %v2831_v0  ;;  %2442 = vmatprep.subr.mxu1 %v2831_v0 }
 0x404   :  { %2408 = vmatpush3.msra.mxu0 %v2959_v14  ;;  %2443 = vmatpush3.msra.mxu1 %v2959_v14 }
 0x405   :  { %2409 = vmatprep.subr.mxu0 %v2831_v0  ;;  %2444 = vmatprep.subr.mxu1 %v2831_v0 }
 0x406   :  { %2410 = vmatpush3.msra.mxu0 %v2965_v15  ;;  %2445 = vmatpush3.msra.mxu1 %v2965_v15 }
 0x407   :  { %2411 = vmatprep.subr.mxu0 %v2831_v0  ;;  %2446 = vmatprep.subr.mxu1 %v2831_v0 }
 0x408   :  { %2412 = vmatpush3.msra.mxu0 %v2971_v16  ;;  %2447 = vmatpush3.msra.mxu1 %v2971_v16 }
 0x409   :  { %2413 = vmatprep.subr.mxu0 %v2831_v0  ;;  %2448 = vmatprep.subr.mxu1 %v2831_v0 }
 0x40a   :  { %2414 = vmatpush3.msra.mxu0 %v2977_v17  ;;  %2449 = vmatpush3.msra.mxu1 %v2977_v17 }
 0x40b   :  { %2415 = vmatprep.subr.mxu0 %v2831_v0  ;;  %2450 = vmatprep.subr.mxu1 %v2831_v0 }
 0x40c   :  { %2416 = vmatpush3.msra.mxu0 %v2991_v18  ;;  %2451 = vmatpush3.msra.mxu1 %v2991_v18 }
 0x40d   :  { %2417 = vmatprep.subr.mxu0 %v2831_v0  ;;  %2452 = vmatprep.subr.mxu1 %v2831_v0 }
 0x40e   :  { %2418 = vmatpush3.msra.mxu0 %v2997_v19  ;;  %2419 = vmatprep.mubr.msk.f32.mxu0 %vm2832_vm0, %v2831_v0 }
 0x40f   :  { %2453 = vmatpush3.msra.mxu1 %v2997_v19  ;;  %2454 = vmatprep.mubr.msk.f32.mxu1 %vm2832_vm0, %v2831_v0 }
 0x410   :  { %2457 = vmatprep.subr.mxu0 %v2831_v0  ;;  %2492 = vmatprep.subr.mxu1 %v2831_v0 }
 0x4af   :  { %v878_v52 = vpop.f32.mrf.mxu0  ;;  %v948_v53 = vpop.f32.mrf.mxu1 }
 0x4b0   :  { %v879_v54 = vadd.f32 %v3077_v27, %v878_v52  ;;  %v949_v55 = vadd.f32 %v3077_v27, %v948_v53  ;;  %v1682_v52 = vld [vmem:[%s3659_s6] ss:$0 sm:$0xff] }
 0x4b1   :  { %v2351_v56 = vpop.f32.mrf.mxu0  ;;  %v2386_v57 = vpop.f32.mrf.mxu1 }
 0x4b2   :  { %2420 = vmatmul.mubr.f32.vlgmr.msra.gmra.mxu0 %v879_v54  ;;  %2455 = vmatmul.mubr.f32.vlgmr.msra.gmra.mxu1 %v949_v55 }
 0x4b3   :  { %2458 = vmatpush3.msra.mxu0 %v2901_v4  ;;  %2493 = vmatpush3.msra.mxu1 %v2901_v4  ;;  %v3449_v4 = vld [vmem:[#allocation2 + $0x60] sm:$0xff] }
 0x4b4   :  { %2459 = vmatprep.subr.mxu0 %v2831_v0  ;;  %2494 = vmatprep.subr.mxu1 %v2831_v0 }
 0x4b5   :  { %2460 = vmatpush3.msra.mxu0 %v2905_v5  ;;  %2495 = vmatpush3.msra.mxu1 %v2905_v5  ;;  %v3455_v5 = vld [vmem:[#allocation2 + $0x58] sm:$0xff] }
 0x4b6   :  { %2461 = vmatprep.subr.mxu0 %v2831_v0  ;;  %2496 = vmatprep.subr.mxu1 %v2831_v0 }
 0x4b7   :  { %2462 = vmatpush3.msra.mxu0 %v2911_v6  ;;  %2497 = vmatpush3.msra.mxu1 %v2911_v6  ;;  %v3461_v6 = vld [vmem:[#allocation2 + $0x50] sm:$0xff] }
 0x4b8   :  { %2463 = vmatprep.subr.mxu0 %v2831_v0  ;;  %2498 = vmatprep.subr.mxu1 %v2831_v0 }
 0x4b9   :  { %2464 = vmatpush3.msra.mxu0 %v2917_v7  ;;  %2499 = vmatpush3.msra.mxu1 %v2917_v7  ;;  %v3467_v7 = vld [vmem:[#allocation2 + $0x48] sm:$0xff] }
 0x4ba   :  { %2465 = vmatprep.subr.mxu0 %v2831_v0  ;;  %2500 = vmatprep.subr.mxu1 %v2831_v0 }
 0x4bb   :  { %2466 = vmatpush3.msra.mxu0 %v2923_v8  ;;  %2501 = vmatpush3.msra.mxu1 %v2923_v8  ;;  %v3473_v8 = vld [vmem:[#allocation2 + $0x40] sm:$0xff] }
 0x4bc   :  { %2467 = vmatprep.subr.mxu0 %v2831_v0  ;;  %2502 = vmatprep.subr.mxu1 %v2831_v0 }
 0x4bd   :  { %2468 = vmatpush3.msra.mxu0 %v2929_v9  ;;  %2503 = vmatpush3.msra.mxu1 %v2929_v9  ;;  %v3479_v9 = vld [vmem:[#allocation2 + $0x38] sm:$0xff] }
 0x4be   :  { %2469 = vmatprep.subr.mxu0 %v2831_v0  ;;  %2504 = vmatprep.subr.mxu1 %v2831_v0 }
 0x4bf   :  { %2470 = vmatpush3.msra.mxu0 %v2935_v10  ;;  %2505 = vmatpush3.msra.mxu1 %v2935_v10  ;;  %v3485_v10 = vld [vmem:[#allocation2 + $0x30] sm:$0xff] }
 0x4c0   :  { %2471 = vmatprep.subr.mxu0 %v2831_v0  ;;  %2506 = vmatprep.subr.mxu1 %v2831_v0 }
 0x4c1   :  { %2472 = vmatpush3.msra.mxu0 %v2941_v11  ;;  %2507 = vmatpush3.msra.mxu1 %v2941_v11  ;;  %v3491_v11 = vld [vmem:[#allocation2 + $0x28] sm:$0xff] }
 0x4c2   :  { %2473 = vmatprep.subr.mxu0 %v2831_v0  ;;  %2508 = vmatprep.subr.mxu1 %v2831_v0 }
 0x4c3   :  { %2474 = vmatpush3.msra.mxu0 %v2947_v12  ;;  %2509 = vmatpush3.msra.mxu1 %v2947_v12  ;;  %v3497_v12 = vld [vmem:[#allocation2 + $0x20] sm:$0xff] }
 0x4c4   :  { %2475 = vmatprep.subr.mxu0 %v2831_v0  ;;  %2510 = vmatprep.subr.mxu1 %v2831_v0 }
 0x4c5   :  { %2476 = vmatpush3.msra.mxu0 %v2953_v13  ;;  %2511 = vmatpush3.msra.mxu1 %v2953_v13  ;;  %v3503_v13 = vld [vmem:[#allocation2 + $0x18] sm:$0xff] }
 0x4c6   :  { %2477 = vmatprep.subr.mxu0 %v2831_v0  ;;  %2512 = vmatprep.subr.mxu1 %v2831_v0 }
 0x4c7   :  { %2478 = vmatpush3.msra.mxu0 %v2959_v14  ;;  %2513 = vmatpush3.msra.mxu1 %v2959_v14  ;;  %v3509_v14 = vld [vmem:[#allocation2 + $0x10] sm:$0xff] }
 0x4c8   :  { %2479 = vmatprep.subr.mxu0 %v2831_v0  ;;  %2514 = vmatprep.subr.mxu1 %v2831_v0 }
 0x4c9   :  { %2480 = vmatpush3.msra.mxu0 %v2965_v15  ;;  %2515 = vmatpush3.msra.mxu1 %v2965_v15  ;;  %v3515_v15 = vld [vmem:[#allocation2 + $0x8] sm:$0xff] }
 0x4ca   :  { %2481 = vmatprep.subr.mxu0 %v2831_v0  ;;  %2516 = vmatprep.subr.mxu1 %v2831_v0 }
 0x4cb   :  { %2482 = vmatpush3.msra.mxu0 %v2971_v16  ;;  %2517 = vmatpush3.msra.mxu1 %v2971_v16  ;;  %v3521_v16 = vld [vmem:[#allocation2] sm:$0xff] }
 0x4cc   :  { %2483 = vmatprep.subr.mxu0 %v2831_v0  ;;  %2518 = vmatprep.subr.mxu1 %v2831_v0 }
 0x4cd   :  { %2484 = vmatpush3.msra.mxu0 %v2977_v17  ;;  %2519 = vmatpush3.msra.mxu1 %v2977_v17 }
 0x4ce   :  { %2485 = vmatprep.subr.mxu0 %v2831_v0  ;;  %2520 = vmatprep.subr.mxu1 %v2831_v0 }
 0x4cf   :  { %2486 = vmatpush3.msra.mxu0 %v2991_v18  ;;  %2521 = vmatpush3.msra.mxu1 %v2991_v18 }
 0x4d0   :  { %2487 = vmatprep.subr.mxu0 %v2831_v0  ;;  %2522 = vmatprep.subr.mxu1 %v2831_v0 }
 0x4d1   :  { %2488 = vmatpush3.msra.mxu0 %v2997_v19  ;;  %2489 = vmatprep.mubr.msk.f32.mxu0 %vm2832_vm0, %v2831_v0 }
 0x4d2   :  { %2523 = vmatpush3.msra.mxu1 %v2997_v19  ;;  %2524 = vmatprep.mubr.msk.f32.mxu1 %vm2832_vm0, %v2831_v0 }
 0x4d3   :  { %2527 = vmatprep.subr.mxu0 %v2831_v0  ;;  %2562 = vmatprep.subr.mxu1 %v2831_v0 }
 0x572   :  { %v1018_v58 = vpop.f32.mrf.mxu0  ;;  %v1088_v59 = vpop.f32.mrf.mxu1 }
 0x573   :  { %v1019_v60 = vadd.f32 %v3077_v27, %v1018_v58  ;;  %v1089_v61 = vadd.f32 %v3077_v27, %v1088_v59 }
 0x574   :  { %v2421_v62 = vpop.f32.mrf.mxu0  ;;  %v2456_v63 = vpop.f32.mrf.mxu1 }
 0x575   :  { %2490 = vmatmul.mubr.f32.vlgmr.msra.gmra.mxu0 %v1019_v60  ;;  %2525 = vmatmul.mubr.f32.vlgmr.msra.gmra.mxu1 %v1089_v61 }
 0x576   :  { %2528 = vmatpush3.msra.mxu0 %v3431_v1  ;;  %2563 = vmatpush3.msra.mxu1 %v3431_v1 }
 0x577   :  { %2529 = vmatprep.subr.mxu0 %v2831_v0  ;;  %2564 = vmatprep.subr.mxu1 %v2831_v0 }
 0x578   :  { %2530 = vmatpush3.msra.mxu0 %v3437_v2  ;;  %2565 = vmatpush3.msra.mxu1 %v3437_v2 }
 0x579   :  { %2531 = vmatprep.subr.mxu0 %v2831_v0  ;;  %2566 = vmatprep.subr.mxu1 %v2831_v0 }
 0x57a   :  { %2532 = vmatpush3.msra.mxu0 %v3443_v3  ;;  %2567 = vmatpush3.msra.mxu1 %v3443_v3 }
 0x57b   :  { %2533 = vmatprep.subr.mxu0 %v2831_v0  ;;  %2568 = vmatprep.subr.mxu1 %v2831_v0 }
 0x57c   :  { %2534 = vmatpush3.msra.mxu0 %v3449_v4  ;;  %2569 = vmatpush3.msra.mxu1 %v3449_v4 }
 0x57d   :  { %2535 = vmatprep.subr.mxu0 %v2831_v0  ;;  %2570 = vmatprep.subr.mxu1 %v2831_v0 }
 0x57e   :  { %2536 = vmatpush3.msra.mxu0 %v3455_v5  ;;  %2571 = vmatpush3.msra.mxu1 %v3455_v5 }
 0x57f   :  { %2537 = vmatprep.subr.mxu0 %v2831_v0  ;;  %2572 = vmatprep.subr.mxu1 %v2831_v0 }
 0x580   :  { %2538 = vmatpush3.msra.mxu0 %v3461_v6  ;;  %2573 = vmatpush3.msra.mxu1 %v3461_v6 }
 0x581   :  { %2539 = vmatprep.subr.mxu0 %v2831_v0  ;;  %2574 = vmatprep.subr.mxu1 %v2831_v0 }
 0x582   :  { %2540 = vmatpush3.msra.mxu0 %v3467_v7  ;;  %2575 = vmatpush3.msra.mxu1 %v3467_v7 }
 0x583   :  { %2541 = vmatprep.subr.mxu0 %v2831_v0  ;;  %2576 = vmatprep.subr.mxu1 %v2831_v0 }
 0x584   :  { %2542 = vmatpush3.msra.mxu0 %v3473_v8  ;;  %2577 = vmatpush3.msra.mxu1 %v3473_v8 }
 0x585   :  { %2543 = vmatprep.subr.mxu0 %v2831_v0  ;;  %2578 = vmatprep.subr.mxu1 %v2831_v0 }
 0x586   :  { %2544 = vmatpush3.msra.mxu0 %v3479_v9  ;;  %2579 = vmatpush3.msra.mxu1 %v3479_v9 }
 0x587   :  { %2545 = vmatprep.subr.mxu0 %v2831_v0  ;;  %2580 = vmatprep.subr.mxu1 %v2831_v0 }
 0x588   :  { %2546 = vmatpush3.msra.mxu0 %v3485_v10  ;;  %2581 = vmatpush3.msra.mxu1 %v3485_v10 }
 0x589   :  { %2547 = vmatprep.subr.mxu0 %v2831_v0  ;;  %2582 = vmatprep.subr.mxu1 %v2831_v0 }
 0x58a   :  { %2548 = vmatpush3.msra.mxu0 %v3491_v11  ;;  %2583 = vmatpush3.msra.mxu1 %v3491_v11 }
 0x58b   :  { %2549 = vmatprep.subr.mxu0 %v2831_v0  ;;  %2584 = vmatprep.subr.mxu1 %v2831_v0 }
 0x58c   :  { %2550 = vmatpush3.msra.mxu0 %v3497_v12  ;;  %2585 = vmatpush3.msra.mxu1 %v3497_v12 }
 0x58d   :  { %2551 = vmatprep.subr.mxu0 %v2831_v0  ;;  %2586 = vmatprep.subr.mxu1 %v2831_v0 }
 0x58e   :  { %2552 = vmatpush3.msra.mxu0 %v3503_v13  ;;  %2587 = vmatpush3.msra.mxu1 %v3503_v13 }
 0x58f   :  { %2553 = vmatprep.subr.mxu0 %v2831_v0  ;;  %2588 = vmatprep.subr.mxu1 %v2831_v0 }
 0x590   :  { %2554 = vmatpush3.msra.mxu0 %v3509_v14  ;;  %2589 = vmatpush3.msra.mxu1 %v3509_v14 }
 0x591   :  { %2555 = vmatprep.subr.mxu0 %v2831_v0  ;;  %2590 = vmatprep.subr.mxu1 %v2831_v0 }
 0x592   :  { %2556 = vmatpush3.msra.mxu0 %v3515_v15  ;;  %2591 = vmatpush3.msra.mxu1 %v3515_v15 }
 0x593   :  { %2557 = vmatprep.subr.mxu0 %v2831_v0  ;;  %2592 = vmatprep.subr.mxu1 %v2831_v0 }
 0x594   :  { %2558 = vmatpush3.msra.mxu0 %v3521_v16  ;;  %2559 = vmatprep.mubr.msk.f32.mxu0 %vm2832_vm0, %v2831_v0 }
 0x595   :  { %2593 = vmatpush3.msra.mxu1 %v3521_v16  ;;  %2594 = vmatprep.mubr.msk.f32.mxu1 %vm2832_vm0, %v2831_v0 }
 0x596   :  { %2597 = vmatprep.subr.mxu0 %v2831_v0  ;;  %2632 = vmatprep.subr.mxu1 %v2831_v0 }
 0x635   :  { %v1158_v17 = vpop.f32.mrf.mxu0  ;;  %v1228_v18 = vpop.f32.mrf.mxu1 }
 0x636   :  { %v1159_v19 = vadd.f32 %v3077_v27, %v1158_v17  ;;  %v1229_v20 = vadd.f32 %v3077_v27, %v1228_v18 }
 0x637   :  { %v2491_v21 = vpop.f32.mrf.mxu0  ;;  %v2526_v22 = vpop.f32.mrf.mxu1 }
 0x638   :  { %2560 = vmatmul.mubr.f32.vlgmr.msra.gmra.mxu0 %v1159_v19  ;;  %2595 = vmatmul.mubr.f32.vlgmr.msra.gmra.mxu1 %v1229_v20 }
 0x639   :  { %2598 = vmatpush3.msra.mxu0 %v3431_v1  ;;  %2633 = vmatpush3.msra.mxu1 %v3431_v1 }
 0x63a   :  { %2599 = vmatprep.subr.mxu0 %v2831_v0  ;;  %2634 = vmatprep.subr.mxu1 %v2831_v0 }
 0x63b   :  { %2600 = vmatpush3.msra.mxu0 %v3437_v2  ;;  %2635 = vmatpush3.msra.mxu1 %v3437_v2 }
 0x63c   :  { %2601 = vmatprep.subr.mxu0 %v2831_v0  ;;  %2636 = vmatprep.subr.mxu1 %v2831_v0 }
 0x63d   :  { %2602 = vmatpush3.msra.mxu0 %v3443_v3  ;;  %2637 = vmatpush3.msra.mxu1 %v3443_v3 }
 0x63e   :  { %2603 = vmatprep.subr.mxu0 %v2831_v0  ;;  %2638 = vmatprep.subr.mxu1 %v2831_v0 }
 0x63f   :  { %2604 = vmatpush3.msra.mxu0 %v3449_v4  ;;  %2639 = vmatpush3.msra.mxu1 %v3449_v4 }
 0x640   :  { %2605 = vmatprep.subr.mxu0 %v2831_v0  ;;  %2640 = vmatprep.subr.mxu1 %v2831_v0 }
 0x641   :  { %2606 = vmatpush3.msra.mxu0 %v3455_v5  ;;  %2641 = vmatpush3.msra.mxu1 %v3455_v5 }
 0x642   :  { %2607 = vmatprep.subr.mxu0 %v2831_v0  ;;  %2642 = vmatprep.subr.mxu1 %v2831_v0 }
 0x643   :  { %2608 = vmatpush3.msra.mxu0 %v3461_v6  ;;  %2643 = vmatpush3.msra.mxu1 %v3461_v6 }
 0x644   :  { %2609 = vmatprep.subr.mxu0 %v2831_v0  ;;  %2644 = vmatprep.subr.mxu1 %v2831_v0 }
 0x645   :  { %2610 = vmatpush3.msra.mxu0 %v3467_v7  ;;  %2645 = vmatpush3.msra.mxu1 %v3467_v7 }
 0x646   :  { %2611 = vmatprep.subr.mxu0 %v2831_v0  ;;  %2646 = vmatprep.subr.mxu1 %v2831_v0 }
 0x647   :  { %2612 = vmatpush3.msra.mxu0 %v3473_v8  ;;  %2647 = vmatpush3.msra.mxu1 %v3473_v8 }
 0x648   :  { %2613 = vmatprep.subr.mxu0 %v2831_v0  ;;  %2648 = vmatprep.subr.mxu1 %v2831_v0 }
 0x649   :  { %2614 = vmatpush3.msra.mxu0 %v3479_v9  ;;  %2649 = vmatpush3.msra.mxu1 %v3479_v9 }
 0x64a   :  { %2615 = vmatprep.subr.mxu0 %v2831_v0  ;;  %2650 = vmatprep.subr.mxu1 %v2831_v0 }
 0x64b   :  { %2616 = vmatpush3.msra.mxu0 %v3485_v10  ;;  %2651 = vmatpush3.msra.mxu1 %v3485_v10 }
 0x64c   :  { %2617 = vmatprep.subr.mxu0 %v2831_v0  ;;  %2652 = vmatprep.subr.mxu1 %v2831_v0 }
 0x64d   :  { %2618 = vmatpush3.msra.mxu0 %v3491_v11  ;;  %2653 = vmatpush3.msra.mxu1 %v3491_v11 }
 0x64e   :  { %2619 = vmatprep.subr.mxu0 %v2831_v0  ;;  %2654 = vmatprep.subr.mxu1 %v2831_v0 }
 0x64f   :  { %2620 = vmatpush3.msra.mxu0 %v3497_v12  ;;  %2655 = vmatpush3.msra.mxu1 %v3497_v12 }
 0x650   :  { %2621 = vmatprep.subr.mxu0 %v2831_v0  ;;  %2656 = vmatprep.subr.mxu1 %v2831_v0 }
 0x651   :  { %2622 = vmatpush3.msra.mxu0 %v3503_v13  ;;  %2657 = vmatpush3.msra.mxu1 %v3503_v13 }
 0x652   :  { %2623 = vmatprep.subr.mxu0 %v2831_v0  ;;  %2658 = vmatprep.subr.mxu1 %v2831_v0 }
 0x653   :  { %2624 = vmatpush3.msra.mxu0 %v3509_v14  ;;  %2659 = vmatpush3.msra.mxu1 %v3509_v14 }
 0x654   :  { %2625 = vmatprep.subr.mxu0 %v2831_v0  ;;  %2660 = vmatprep.subr.mxu1 %v2831_v0 }
 0x655   :  { %2626 = vmatpush3.msra.mxu0 %v3515_v15  ;;  %2661 = vmatpush3.msra.mxu1 %v3515_v15 }
 0x656   :  { %2627 = vmatprep.subr.mxu0 %v2831_v0  ;;  %2662 = vmatprep.subr.mxu1 %v2831_v0 }
 0x657   :  { %2628 = vmatpush3.msra.mxu0 %v3521_v16  ;;  %2629 = vmatprep.mubr.msk.f32.mxu0 %vm2832_vm0, %v2831_v0 }
 0x658   :  { %2663 = vmatpush3.msra.mxu1 %v3521_v16  ;;  %2664 = vmatprep.mubr.msk.f32.mxu1 %vm2832_vm0, %v2831_v0 }
 0x659   :  { %2667 = vmatprep.subr.mxu0 %v2831_v0  ;;  %2702 = vmatprep.subr.mxu1 %v2831_v0 }
 0x6f8   :  { %v1298_v23 = vpop.f32.mrf.mxu0  ;;  %v1368_v24 = vpop.f32.mrf.mxu1 }
 0x6f9   :  { %v1299_v26 = vadd.f32 %v3604_v25, %v1298_v23  ;;  %v1369_v27 = vadd.f32 %v3604_v25, %v1368_v24 }
 0x6fa   :  { %v2561_v29 = vpop.f32.mrf.mxu0  ;;  %v2596_v30 = vpop.f32.mrf.mxu1 }
 0x6fb   :  { %2630 = vmatmul.mubr.f32.vlgmr.msra.gmra.mxu0 %v1299_v26  ;;  %2665 = vmatmul.mubr.f32.vlgmr.msra.gmra.mxu1 %v1369_v27 }
 0x6fc   :  { %2668 = vmatpush3.msra.mxu0 %v87_v28  ;;  %2703 = vmatpush3.msra.mxu1 %v87_v28 }
 0x6fd   :  { %2669 = vmatprep.subr.mxu0 %v2831_v0  ;;  %2704 = vmatprep.subr.mxu1 %v2831_v0 }
 0x6fe   :  { %2670 = vmatpush3.msra.mxu0 %v86_v31  ;;  %2705 = vmatpush3.msra.mxu1 %v86_v31 }
 0x6ff   :  { %2671 = vmatprep.subr.mxu0 %v2831_v0  ;;  %2706 = vmatprep.subr.mxu1 %v2831_v0 }
 0x700   :  { %2672 = vmatpush3.msra.mxu0 %v85_v32  ;;  %2707 = vmatpush3.msra.mxu1 %v85_v32 }
 0x701   :  { %2673 = vmatprep.subr.mxu0 %v2831_v0  ;;  %2708 = vmatprep.subr.mxu1 %v2831_v0 }
 0x702   :  { %2674 = vmatpush3.msra.mxu0 %v84_v33  ;;  %2709 = vmatpush3.msra.mxu1 %v84_v33 }
 0x703   :  { %2675 = vmatprep.subr.mxu0 %v2831_v0  ;;  %2710 = vmatprep.subr.mxu1 %v2831_v0 }
 0x704   :  { %2676 = vmatpush3.msra.mxu0 %v83_v34  ;;  %2711 = vmatpush3.msra.mxu1 %v83_v34 }
 0x705   :  { %2677 = vmatprep.subr.mxu0 %v2831_v0  ;;  %2712 = vmatprep.subr.mxu1 %v2831_v0 }
 0x706   :  { %2678 = vmatpush3.msra.mxu0 %v82_v35  ;;  %2713 = vmatpush3.msra.mxu1 %v82_v35 }
 0x707   :  { %2679 = vmatprep.subr.mxu0 %v2831_v0  ;;  %2714 = vmatprep.subr.mxu1 %v2831_v0 }
 0x708   :  { %2680 = vmatpush3.msra.mxu0 %v81_v36  ;;  %2715 = vmatpush3.msra.mxu1 %v81_v36 }
 0x709   :  { %2681 = vmatprep.subr.mxu0 %v2831_v0  ;;  %2716 = vmatprep.subr.mxu1 %v2831_v0 }
 0x70a   :  { %2682 = vmatpush3.msra.mxu0 %v80_v37  ;;  %2717 = vmatpush3.msra.mxu1 %v80_v37 }
 0x70b   :  { %2683 = vmatprep.subr.mxu0 %v2831_v0  ;;  %2718 = vmatprep.subr.mxu1 %v2831_v0 }
 0x70c   :  { %2684 = vmatpush3.msra.mxu0 %v79_v38  ;;  %2719 = vmatpush3.msra.mxu1 %v79_v38 }
 0x70d   :  { %2685 = vmatprep.subr.mxu0 %v2831_v0  ;;  %2720 = vmatprep.subr.mxu1 %v2831_v0 }
 0x70e   :  { %2686 = vmatpush3.msra.mxu0 %v78_v39  ;;  %2721 = vmatpush3.msra.mxu1 %v78_v39 }
 0x70f   :  { %2687 = vmatprep.subr.mxu0 %v2831_v0  ;;  %2722 = vmatprep.subr.mxu1 %v2831_v0 }
 0x710   :  { %2688 = vmatpush3.msra.mxu0 %v77_v40  ;;  %2723 = vmatpush3.msra.mxu1 %v77_v40 }
 0x711   :  { %2689 = vmatprep.subr.mxu0 %v2831_v0  ;;  %2724 = vmatprep.subr.mxu1 %v2831_v0 }
 0x712   :  { %2690 = vmatpush3.msra.mxu0 %v76_v41  ;;  %2725 = vmatpush3.msra.mxu1 %v76_v41 }
 0x713   :  { %2691 = vmatprep.subr.mxu0 %v2831_v0  ;;  %2726 = vmatprep.subr.mxu1 %v2831_v0 }
 0x714   :  { %2692 = vmatpush3.msra.mxu0 %v75_v42  ;;  %2727 = vmatpush3.msra.mxu1 %v75_v42 }
 0x715   :  { %2693 = vmatprep.subr.mxu0 %v2831_v0  ;;  %2728 = vmatprep.subr.mxu1 %v2831_v0 }
 0x716   :  { %2694 = vmatpush3.msra.mxu0 %v74_v43  ;;  %2729 = vmatpush3.msra.mxu1 %v74_v43 }
 0x717   :  { %2695 = vmatprep.subr.mxu0 %v2831_v0  ;;  %2730 = vmatprep.subr.mxu1 %v2831_v0 }
 0x718   :  { %2699 = vmatprep.mubr.msk.f32.mxu0 %vm2832_vm0, %v2831_v0  ;;  %2734 = vmatprep.mubr.msk.f32.mxu1 %vm2832_vm0, %v2831_v0 }
 0x719   :  { %2696 = vmatpush3.msra.mxu0 %v73_v44  ;;  %2731 = vmatpush3.msra.mxu1 %v73_v44 }
 0x71a   :  { %2697 = vmatprep.subr.mxu0 %v2831_v0  ;;  %2732 = vmatprep.subr.mxu1 %v2831_v0 }
 0x71b   :  { %2698 = vmatpush3.msra.mxu0 %v72_v45  ;;  %2733 = vmatpush3.msra.mxu1 %v72_v45 }
 0x7bb   :  { %v1438_v46 = vpop.f32.mrf.mxu0  ;;  %v1508_v47 = vpop.f32.mrf.mxu1 }
 0x7bc   :  { %v1439_v48 = vadd.f32 %v3604_v25, %v1438_v46  ;;  %v1509_v49 = vadd.f32 %v3604_v25, %v1508_v47 }
 0x7bd   :  { %v2631_v50 = vpop.f32.mrf.mxu0  ;;  %v2666_v51 = vpop.f32.mrf.mxu1 }
 0x7be   :  { %2700 = vmatmul.mubr.f32.vlgmr.msra.gmra.mxu0 %v1439_v48  ;;  %2735 = vmatmul.mubr.f32.vlgmr.msra.gmra.mxu1 %v1509_v49 }
 0x87e   :  { %v1584_v0 = vpop.f32.mrf.mxu0  ;;  %v1655_v53 = vpop.f32.mrf.mxu1 }
 0x87f   :  { %v1585_v54 = vadd.f32 %v1682_v52, %v1584_v0  ;;  %v1656_v55 = vadd.f32 %v1682_v52, %v1655_v53 }
 0x880   :  { %v2701_v56 = vpop.f32.mrf.mxu0  ;;  %v2736_v57 = vpop.f32.mrf.mxu1 }
 0x881   :  { %1588 = vst [vmem:[#allocation7] sm:$0xff] %v1585_v54  ;;  %1659 = vst [vmem:[#allocation7 + $0x8] sm:$0xff] %v1656_v55 }
 0x882   :  { %2812 = shalt.err (!%p2809_p0)
}
 0x883   :  { %1671 = dma.vmem_to_hbm [thread:$0]  %s1666_s22, 256, %s3660_s7, [#allocation4], %s2828_s27, %s2828_s27, %s2829_s28  }
 0x884   :  { %2825 = dma.done.wait [#allocation4], 256  }
 0x885   :  { %2826 = vsyncadd [#allocation4], 4294967040 }
 0x886   :  { %1675 = vsyncpa [#allocation3], 1 }
 0x887   :  { %1676 = vsyncpa [#allocation6], 1 }
 0x888   :  { %1677 = vsyncpa [#allocation4], 1 }

</bundles_post_ra>
